<compile_context>
chip_gen: v7x
topology: tpu7x:2x2x1
jax: 0.10.0
libtpu: 0.0.40
codegen_flags: <defaults>
</compile_context>

<pallas_src>
import functools

import jax
import jax.numpy as jnp
from jax import lax
from jax.experimental import pallas as pl
from jax.experimental.pallas import tpu as pltpu

LANE = 128


def _round_up(x, m):
    return ((x + m - 1) // m) * m


def user_encoder_kernel(x_ref, mask_ref, pad_ref,
                        wbig_ref, b1_ref, w2_ref, b2_ref,
                        gbias_ref, whh_ref, bhn_ref,
                        gamma_ref, beta_ref, alpha_ref,
                        out_ref, gproj_scr, *, gru_unroll):
    # x_ref: (L, TB, D) time-major; mask_ref: (L, TB, 1); out_ref: (TB, D)
    L, TB, D = x_ref.shape
    Q = b1_ref.shape[1]
    Dp = whh_ref.shape[1] // 3          # per-gate column stride (128-lane aligned)
    Qp = wbig_ref.shape[1] - 3 * Dp     # start of the gate segment in the fused RHS

    # ---- mask mix: xm = m*x + (1-m)*pad (f32 VPU) ----
    m = mask_ref[...]                                        # (L, TB, 1)
    x = x_ref[...].astype(jnp.float32)                       # (L, TB, D)
    xm = x * m + pad_ref[...][None] * (1.0 - m)              # (L, TB, D)

    # ---- ONE fused big-M matmul: [attn W1 | Wi_r | Wi_z | Wi_n] ----
    xm2 = xm.reshape(L * TB, D).astype(wbig_ref.dtype)
    proj = jnp.dot(xm2, wbig_ref[...],
                   preferred_element_type=jnp.float32)       # (L*TB, Qp+3*Dp)

    # ---- attention pooling (no serial dependence -> outside the GRU loop) ----
    e = jnp.tanh(proj[:, 0:Q] + b1_ref[...])                 # (L*TB, Q)
    score = jnp.sum(e * w2_ref[...], axis=-1, keepdims=True) + b2_ref[0]
    # exp with no max-subtraction, matching the torch AttentionPooling semantics.
    a = jnp.exp(score).reshape(L, TB, 1)
    num = jnp.sum(xm * a, axis=0)                            # (TB, D)
    den = jnp.sum(a, axis=0)                                 # (TB, 1)
    long_term = num / (den + 1e-8)

    # ---- stash gate input-projections (+ input-side biases) for the recurrence ----
    gproj_scr[...] = (proj[:, Qp:Qp + 3 * Dp] + gbias_ref[...]).reshape(L, TB, 3 * Dp)

    # ---- GRU recurrence: only per-step MXU work is ONE fused h @ [Wh_r|Wh_z|Wh_n] ----
    def gru_step(t, h):
        g = gproj_scr[t]                                     # (TB, 3*Dp), contiguous read
        hh = jnp.dot(h.astype(whh_ref.dtype), whh_ref[...],
                     preferred_element_type=jnp.float32)     # (TB, 3*Dp)
        r = jax.nn.sigmoid(g[:, 0:D] + hh[:, 0:D])
        z = jax.nn.sigmoid(g[:, Dp:Dp + D] + hh[:, Dp:Dp + D])
        n = jnp.tanh(g[:, 2 * Dp:2 * Dp + D]
                     + r * (hh[:, 2 * Dp:2 * Dp + D] + bhn_ref[...]))
        return (1.0 - z) * n + z * h

    h0 = jnp.zeros((TB, D), jnp.float32)
    h = lax.fori_loop(0, L, gru_step, h0, unroll=gru_unroll)

    # ---- LayerNorm of the last GRU state (== layer_norm_gru(gru_out)[:, -1, :]) ----
    mu = jnp.mean(h, axis=-1, keepdims=True)
    var = jnp.mean((h - mu) ** 2, axis=-1, keepdims=True)
    short_term = (h - mu) * lax.rsqrt(var + 1e-5) * gamma_ref[...] + beta_ref[...]

    alpha = alpha_ref[0]
    out_ref[...] = alpha * long_term + (1.0 - alpha) * short_term


def user_encoder(news_vecs, log_mask, params, tb=256, compute_dtype=jnp.bfloat16):
    """UserEncoder forward (args.user_log_mask == False branch)."""
    B, L, D = news_vecs.shape
    Q = params["att_w1"].shape[1]
    Dp = _round_up(D, LANE)             # per-gate column stride
    Qp = _round_up(Q, LANE)
    Ncat = Qp + 3 * Dp
    itemsize = jnp.dtype(compute_dtype).itemsize

    # --- generation-aware VMEM budget (v7x: 64 MiB/TC; v5e/v6e: 128 MiB) ---
    try:
        vmem_cap = int(pltpu.get_tpu_info().vmem_capacity_bytes)
    except Exception:
        vmem_cap = 128 * 1024 * 1024
    vmem_budget = int(vmem_cap * 0.7)

    def vmem_estimate(t):
        io = L * t * (D * itemsize + 4) * 2          # x + mask blocks, double-buffered
        scratch = L * t * 3 * Dp * 4                 # gate-projection scratch (f32)
        interm = L * t * (D + Ncat) * 4              # xm + fused-projection intermediates
        weights = (D * Ncat + D * 3 * Dp) * itemsize * 2
        out_b = t * D * 4 * 2
        return io + scratch + interm + weights + out_b

    # users per grid step: multiple of 8 sublanes, aim for >=4 grid steps (keeps both
    # v7x TensorCores busy), shrink until the VMEM estimate fits the chip budget.
    tb = max(8, min(_round_up(int(tb), 8), _round_up(pl.cdiv(B, 4), 8)))
    while tb > 8 and vmem_estimate(tb) > vmem_budget:
        tb = max(8, _round_up(tb // 2, 8))
    Bp = _round_up(B, tb)
    vmem_limit = int(min(0.85 * vmem_cap, max(32 * 1024 * 1024, 2 * vmem_estimate(tb))))

    # --- pad batch, switch to time-major (L, Bp, D) so per-step reads are contiguous ---
    f32 = jnp.float32
    x = news_vecs.astype(f32)
    m = log_mask.astype(f32)
    if Bp != B:
        x = jnp.pad(x, ((0, Bp - B), (0, 0), (0, 0)))
        m = jnp.pad(m, ((0, Bp - B), (0, 0)))
    x_t = jnp.transpose(x, (1, 0, 2)).astype(compute_dtype)   # (L, Bp, D)
    m_t = jnp.transpose(m, (1, 0))[..., None]                  # (L, Bp, 1)

    # --- fused, 128-lane-segment-padded weight matrices (one weight push per matmul) ---
    w_big = jnp.zeros((D, Ncat), f32).at[:, 0:Q].set(params["att_w1"].astype(f32))
    whh_cat = jnp.zeros((D, 3 * Dp), f32)
    gbias_cat = jnp.zeros((1, 3 * Dp), f32)
    for g in range(3):
        w_big = w_big.at[:, Qp + g * Dp:Qp + g * Dp + D].set(params["gru_wi"][g].astype(f32))
        whh_cat = whh_cat.at[:, g * Dp:g * Dp + D].set(params["gru_wh"][g].astype(f32))
        gbias_cat = gbias_cat.at[:, g * Dp:g * Dp + D].set(params["gru_b"][g].astype(f32))
    w_big = w_big.astype(compute_dtype)
    whh_cat = whh_cat.astype(compute_dtype)
    bhn = params["gru_b"][3:4].astype(f32)                     # (1, D)  b_hn

    gru_unroll = True if L <= 8 else 2   # full unroll only for tiny L; bounded for prod L~50
    kernel = functools.partial(user_encoder_kernel, gru_unroll=gru_unroll)

    smem = pltpu.MemorySpace.SMEM
    # TODO(synk): if production news_dim stays < 128, pack several users per 128-lane row
    # (wrapper-side layout plumbing) so the (TB, D) intermediates/output are lane-dense.
    out = pl.pallas_call(
        kernel,
        out_shape=jax.ShapeDtypeStruct((Bp, D), jnp.float32),
        grid=(Bp // tb,),
        in_specs=[
            pl.BlockSpec((L, tb, D), lambda b: (0, b, 0)),          # news, time-major
            pl.BlockSpec((L, tb, 1), lambda b: (0, b, 0)),          # log mask
            pl.BlockSpec((1, D), lambda b: (0, 0)),                 # pad_doc
            pl.BlockSpec((D, Ncat), lambda b: (0, 0)),              # [attn W1 | Wi_r | Wi_z | Wi_n]
            pl.BlockSpec((1, Q), lambda b: (0, 0)),                 # attn b1
            pl.BlockSpec((1, Q), lambda b: (0, 0)),                 # attn w2 (row)
            pl.BlockSpec((1,), lambda b: (0,), memory_space=smem),  # attn b2
            pl.BlockSpec((1, 3 * Dp), lambda b: (0, 0)),            # input-side gate biases
            pl.BlockSpec((D, 3 * Dp), lambda b: (0, 0)),            # [Wh_r | Wh_z | Wh_n]
            pl.BlockSpec((1, D), lambda b: (0, 0)),                 # b_hn
            pl.BlockSpec((1, D), lambda b: (0, 0)),                 # LN gamma
            pl.BlockSpec((1, D), lambda b: (0, 0)),                 # LN beta
            pl.BlockSpec((1,), lambda b: (0,), memory_space=smem),  # alpha
        ],
        out_specs=pl.BlockSpec((tb, D), lambda b: (b, 0)),
        scratch_shapes=[pltpu.VMEM((L, tb, 3 * Dp), jnp.float32)],  # gate input projections
        compiler_params=pltpu.CompilerParams(
            dimension_semantics=("parallel",),
            vmem_limit_bytes=vmem_limit),
    )(x_t, m_t, params["pad_doc"].astype(f32), w_big,
      params["att_b1"].astype(f32), params["att_w2"].astype(f32),
      params["att_b2"].astype(f32), gbias_cat, whh_cat, bhn,
      params["ln_gamma"].astype(f32), params["ln_beta"].astype(f32),
      params["alpha"].astype(f32))
    return out[:B]


def user_encoder_ref(news_vecs, log_mask, params):
    """Pure-JAX reference mirroring the PyTorch forward (user_log_mask=False)."""
    B, L, D = news_vecs.shape
    m = log_mask.astype(jnp.float32)[..., None]
    xm = news_vecs * m + params["pad_doc"][None] * (1.0 - m)
    e = jnp.tanh(jnp.einsum("bld,dq->blq", xm, params["att_w1"]) + params["att_b1"][None])
    s = jnp.sum(e * params["att_w2"][None], axis=-1, keepdims=True) + params["att_b2"][0]
    a = jnp.exp(s)
    a = a / (jnp.sum(a, axis=1, keepdims=True) + 1e-8)
    long_term = jnp.sum(xm * a, axis=1)

    Wi, Wh, gb = params["gru_wi"], params["gru_wh"], params["gru_b"]

    def step(h, xt):
        r = jax.nn.sigmoid(xt @ Wi[0] + h @ Wh[0] + gb[0])
        z = jax.nn.sigmoid(xt @ Wi[1] + h @ Wh[1] + gb[1])
        n = jnp.tanh(xt @ Wi[2] + gb[2] + r * (h @ Wh[2] + gb[3]))
        return (1.0 - z) * n + z * h, None

    h0 = jnp.zeros((B, D), jnp.float32)
    h, _ = lax.scan(step, h0, jnp.swapaxes(xm, 0, 1))
    mu = jnp.mean(h, axis=-1, keepdims=True)
    var = jnp.mean((h - mu) ** 2, axis=-1, keepdims=True)
    short_term = (h - mu) * lax.rsqrt(var + 1e-5) * params["ln_gamma"] + params["ln_beta"]
    alpha = params["alpha"][0]
    return alpha * long_term + (1.0 - alpha) * short_term


if __name__ == "__main__":
    key = jax.random.PRNGKey(0)
    # Small shapes consistent with the module:
    # B=batch, L=args.user_log_length, D=args.news_dim, Q=args.user_query_vector_dim
    B, L, D, Q = 16, 8, 32, 16
    ks = jax.random.split(key, 10)

    news_vecs = jax.random.normal(ks[0], (B, L, D), jnp.float32)
    log_mask = (jax.random.uniform(ks[1], (B, L)) > 0.3).astype(jnp.float32)

    s = float(1.0 / jnp.sqrt(D))
    params = {
        "pad_doc": jax.random.uniform(ks[2], (1, D), jnp.float32, -1.0, 1.0),
        "att_w1": jax.random.uniform(ks[3], (D, Q), jnp.float32, -s, s),
        "att_b1": jax.random.uniform(ks[4], (1, Q), jnp.float32, -s, s),
        "att_w2": jax.random.uniform(ks[5], (1, Q), jnp.float32, -s, s),
        "att_b2": jax.random.uniform(ks[6], (1,), jnp.float32, -s, s),
        # GRU weights already transposed to x @ W form; gate order (r, z, n)
        "gru_wi": jax.random.uniform(ks[7], (3, D, D), jnp.float32, -s, s),
        "gru_wh": jax.random.uniform(ks[8], (3, D, D), jnp.float32, -s, s),
        # rows: b_ir+b_hr, b_iz+b_hz, b_in, b_hn
        "gru_b": jax.random.uniform(ks[9], (4, D), jnp.float32, -s, s),
        "ln_gamma": jnp.ones((1, D), jnp.float32),   # nn.LayerNorm defaults
        "ln_beta": jnp.zeros((1, D), jnp.float32),
        "alpha": jnp.array([0.5], jnp.float32),      # nn.Parameter(torch.tensor(0.5))
    }

    ref = user_encoder_ref(news_vecs, log_mask, params)

    # f32 matmul-operand path: tight check of kernel math / layout.
    out_f32 = jax.block_until_ready(
        user_encoder(news_vecs, log_mask, params, tb=256, compute_dtype=jnp.float32))
    assert out_f32.shape == (B, D), out_f32.shape
    err32 = float(jnp.max(jnp.abs(out_f32 - ref)))
    assert err32 < 2e-3, err32

    # bf16 matmul-operand fast path (f32 accumulation, f32 gates / h / LayerNorm).
    out_bf16 = jax.block_until_ready(
        user_encoder(news_vecs, log_mask, params, tb=256, compute_dtype=jnp.bfloat16))
    err16 = float(jnp.max(jnp.abs(out_bf16 - ref)))
    assert err16 < 1e-1, err16

    print("KERNEL_OK")
</pallas_src>

<mosaic_0001>
module attributes {stable_mosaic.version = 11 : i64} {
  func.func @user_encoder_kernel(%arg0: i32, %arg1: memref<8x8x32xf32, #tpu.memory_space<vmem>>, %arg2: memref<8x8x1xf32, #tpu.memory_space<vmem>>, %arg3: memref<1x32xf32, #tpu.memory_space<vmem>>, %arg4: memref<32x512xf32, #tpu.memory_space<vmem>>, %arg5: memref<1x16xf32, #tpu.memory_space<vmem>>, %arg6: memref<1x16xf32, #tpu.memory_space<vmem>>, %arg7: memref<1xf32, #tpu.memory_space<smem>>, %arg8: memref<1x384xf32, #tpu.memory_space<vmem>>, %arg9: memref<32x384xf32, #tpu.memory_space<vmem>>, %arg10: memref<1x32xf32, #tpu.memory_space<vmem>>, %arg11: memref<1x32xf32, #tpu.memory_space<vmem>>, %arg12: memref<1x32xf32, #tpu.memory_space<vmem>>, %arg13: memref<1xf32, #tpu.memory_space<smem>>, %arg14: memref<8x32xf32, #tpu.memory_space<vmem>>, %arg15: memref<8x8x384xf32, #tpu.memory_space<vmem>>) attributes {dimension_semantics = [#tpu.dimension_semantics<parallel>], iteration_bounds = array<i64: 2>, scalar_prefetch = 0 : i64, scratch_operands = 1 : i64, tpu.core_type = #tpu.core_type<tc>, window_params = [{transform_indices = @transform_0, window_bounds = array<i64: 8, 8, 32>}, {transform_indices = @transform_1, window_bounds = array<i64: 8, 8, 1>}, {pipeline_mode = #tpu.pipeline_mode<synchronous>, transform_indices = @transform_2, window_bounds = array<i64: 1, 32>}, {pipeline_mode = #tpu.pipeline_mode<synchronous>, transform_indices = @transform_3, window_bounds = array<i64: 32, 512>}, {pipeline_mode = #tpu.pipeline_mode<synchronous>, transform_indices = @transform_4, window_bounds = array<i64: 1, 16>}, {pipeline_mode = #tpu.pipeline_mode<synchronous>, transform_indices = @transform_5, window_bounds = array<i64: 1, 16>}, {transform_indices = @transform_6, window_bounds = array<i64: 1>}, {pipeline_mode = #tpu.pipeline_mode<synchronous>, transform_indices = @transform_7, window_bounds = array<i64: 1, 384>}, {pipeline_mode = #tpu.pipeline_mode<synchronous>, transform_indices = @transform_8, window_bounds = array<i64: 32, 384>}, {pipeline_mode = #tpu.pipeline_mode<synchronous>, transform_indices = @transform_9, window_bounds = array<i64: 1, 32>}, {pipeline_mode = #tpu.pipeline_mode<synchronous>, transform_indices = @transform_10, window_bounds = array<i64: 1, 32>}, {pipeline_mode = #tpu.pipeline_mode<synchronous>, transform_indices = @transform_11, window_bounds = array<i64: 1, 32>}, {transform_indices = @transform_12, window_bounds = array<i64: 1>}, {transform_indices = @transform_13, window_bounds = array<i64: 8, 32>}]} {
    %c0 = arith.constant 0 : index
    %c0_0 = arith.constant 0 : index
    %c0_1 = arith.constant 0 : index
    %0 = vector.load %arg2[%c0, %c0_0, %c0_1] : memref<8x8x1xf32, #tpu.memory_space<vmem>>, vector<8x8x1xf32>
    %c0_2 = arith.constant 0 : index
    %c0_3 = arith.constant 0 : index
    %c0_4 = arith.constant 0 : index
    %1 = vector.load %arg1[%c0_2, %c0_3, %c0_4] : memref<8x8x32xf32, #tpu.memory_space<vmem>>, vector<8x8x32xf32>
    %2 = vector.broadcast %0 : vector<8x8x1xf32> to vector<8x8x32xf32>
    %3 = arith.mulf %1, %2 : vector<8x8x32xf32>
    %c0_5 = arith.constant 0 : index
    %c0_6 = arith.constant 0 : index
    %4 = vector.load %arg3[%c0_5, %c0_6] : memref<1x32xf32, #tpu.memory_space<vmem>>, vector<1x32xf32>
    %5 = vector.shape_cast %4 : vector<1x32xf32> to vector<1x1x32xf32>
    %cst = arith.constant 1.000000e+00 : f32
    %6 = vector.broadcast %cst : f32 to vector<8x8x1xf32>
    %7 = arith.subf %6, %0 : vector<8x8x1xf32>
    %8 = vector.broadcast %5 : vector<1x1x32xf32> to vector<8x8x32xf32>
    %9 = vector.broadcast %7 : vector<8x8x1xf32> to vector<8x8x32xf32>
    %10 = arith.mulf %8, %9 : vector<8x8x32xf32>
    %11 = arith.addf %3, %10 : vector<8x8x32xf32>
    %12 = vector.shape_cast %11 : vector<8x8x32xf32> to vector<64x32xf32>
    %c0_7 = arith.constant 0 : index
    %c0_8 = arith.constant 0 : index
    %13 = vector.load %arg4[%c0_7, %c0_8] : memref<32x512xf32, #tpu.memory_space<vmem>>, vector<32x512xf32>
    %cst_9 = arith.constant dense<0.000000e+00> : vector<64x512xf32>
    %14 = tpu.matmul %12, %13, %cst_9 {dimension_numbers = #tpu.dot_dimension_numbers<[1], [0], [0], [1], [0, 0, 1, 1], [], []>} : vector<64x32xf32>, vector<32x512xf32>, vector<64x512xf32> -> vector<64x512xf32>
    %15 = vector.extract_strided_slice %14 {offsets = [0, 0], sizes = [64, 16], strides = [1, 1]} : vector<64x512xf32> to vector<64x16xf32>
    %c0_10 = arith.constant 0 : index
    %c0_11 = arith.constant 0 : index
    %16 = vector.load %arg5[%c0_10, %c0_11] : memref<1x16xf32, #tpu.memory_space<vmem>>, vector<1x16xf32>
    %17 = vector.broadcast %16 : vector<1x16xf32> to vector<64x16xf32>
    %18 = arith.addf %15, %17 : vector<64x16xf32>
    %19 = math.tanh %18 : vector<64x16xf32>
    %c0_12 = arith.constant 0 : index
    %c0_13 = arith.constant 0 : index
    %20 = vector.load %arg6[%c0_12, %c0_13] : memref<1x16xf32, #tpu.memory_space<vmem>>, vector<1x16xf32>
    %21 = vector.broadcast %20 : vector<1x16xf32> to vector<64x16xf32>
    %22 = arith.mulf %19, %21 : vector<64x16xf32>
    %cst_14 = arith.constant dense<0.000000e+00> : vector<64xf32>
    %23 = vector.multi_reduction <add>, %22, %cst_14 [1] : vector<64x16xf32> to vector<64xf32>
    %24 = vector.shape_cast %23 : vector<64xf32> to vector<64x1xf32>
    %c0_15 = arith.constant 0 : index
    %25 = memref.load %arg7[%c0_15] : memref<1xf32, #tpu.memory_space<smem>>
    %26 = vector.broadcast %25 : f32 to vector<64x1xf32>
    %27 = arith.addf %24, %26 : vector<64x1xf32>
    %28 = math.exp %27 : vector<64x1xf32>
    %29 = vector.shape_cast %28 : vector<64x1xf32> to vector<8x8x1xf32>
    %30 = vector.broadcast %29 : vector<8x8x1xf32> to vector<8x8x32xf32>
    %31 = arith.mulf %11, %30 : vector<8x8x32xf32>
    %cst_16 = arith.constant dense<0.000000e+00> : vector<8x32xf32>
    %32 = vector.multi_reduction <add>, %31, %cst_16 [0] : vector<8x8x32xf32> to vector<8x32xf32>
    %cst_17 = arith.constant dense<0.000000e+00> : vector<8x1xf32>
    %33 = vector.multi_reduction <add>, %29, %cst_17 [0] : vector<8x8x1xf32> to vector<8x1xf32>
    %cst_18 = arith.constant 9.99999993E-9 : f32
    %34 = vector.broadcast %cst_18 : f32 to vector<8x1xf32>
    %35 = arith.addf %33, %34 : vector<8x1xf32>
    %36 = vector.broadcast %35 : vector<8x1xf32> to vector<8x32xf32>
    %37 = arith.divf %32, %36 : vector<8x32xf32>
    %38 = vector.extract_strided_slice %14 {offsets = [0, 128], sizes = [64, 384], strides = [1, 1]} : vector<64x512xf32> to vector<64x384xf32>
    %c0_19 = arith.constant 0 : index
    %c0_20 = arith.constant 0 : index
    %39 = vector.load %arg8[%c0_19, %c0_20] : memref<1x384xf32, #tpu.memory_space<vmem>>, vector<1x384xf32>
    %40 = vector.broadcast %39 : vector<1x384xf32> to vector<64x384xf32>
    %41 = arith.addf %38, %40 : vector<64x384xf32>
    %42 = vector.shape_cast %41 : vector<64x384xf32> to vector<8x8x384xf32>
    %c0_21 = arith.constant 0 : index
    %c0_22 = arith.constant 0 : index
    %c0_23 = arith.constant 0 : index
    %43 = vector.load %arg15[%c0_21, %c0_22, %c0_23] : memref<8x8x384xf32, #tpu.memory_space<vmem>>, vector<8x8x384xf32>
    tpu.vector_store %arg15[%c0_21, %c0_22, %c0_23], %42 {strides = array<i32>} : memref<8x8x384xf32, #tpu.memory_space<vmem>>, vector<8x8x384xf32>,
    %cst_24 = arith.constant 0.000000e+00 : f32
    %44 = vector.broadcast %cst_24 : f32 to vector<8x32xf32>
    %c0_i32 = arith.constant 0 : i32
    %45 = arith.index_cast %c0_i32 : i32 to index
    %c0_25 = arith.constant 0 : index
    %c0_26 = arith.constant 0 : index
    %46 = vector.load %arg15[%45, %c0_25, %c0_26] : memref<8x8x384xf32, #tpu.memory_space<vmem>>, vector<1x8x384xf32>
    %47 = vector.shape_cast %46 : vector<1x8x384xf32> to vector<8x384xf32>
    %c0_27 = arith.constant 0 : index
    %c0_28 = arith.constant 0 : index
    %48 = vector.load %arg9[%c0_27, %c0_28] : memref<32x384xf32, #tpu.memory_space<vmem>>, vector<32x384xf32>
    %cst_29 = arith.constant dense<0.000000e+00> : vector<8x384xf32>
    %49 = tpu.matmul %44, %48, %cst_29 {dimension_numbers = #tpu.dot_dimension_numbers<[1], [0], [0], [1], [0, 0, 1, 1], [], []>} : vector<8x32xf32>, vector<32x384xf32>, vector<8x384xf32> -> vector<8x384xf32>
    %50 = vector.extract_strided_slice %47 {offsets = [0, 0], sizes = [8, 32], strides = [1, 1]} : vector<8x384xf32> to vector<8x32xf32>
    %51 = vector.extract_strided_slice %49 {offsets = [0, 0], sizes = [8, 32], strides = [1, 1]} : vector<8x384xf32> to vector<8x32xf32>
    %52 = arith.addf %50, %51 : vector<8x32xf32>
    %53 = arith.negf %52 : vector<8x32xf32>
    %54 = math.exp %53 : vector<8x32xf32>
    %cst_30 = arith.constant 1.000000e+00 : f32
    %55 = vector.broadcast %cst_30 : f32 to vector<8x32xf32>
    %56 = arith.addf %55, %54 : vector<8x32xf32>
    %57 = arith.divf %55, %56 : vector<8x32xf32>
    %58 = vector.extract_strided_slice %47 {offsets = [0, 128], sizes = [8, 32], strides = [1, 1]} : vector<8x384xf32> to vector<8x32xf32>
    %59 = vector.extract_strided_slice %49 {offsets = [0, 128], sizes = [8, 32], strides = [1, 1]} : vector<8x384xf32> to vector<8x32xf32>
    %60 = arith.addf %58, %59 : vector<8x32xf32>
    %61 = arith.negf %60 : vector<8x32xf32>
    %62 = math.exp %61 : vector<8x32xf32>
    %cst_31 = arith.constant 1.000000e+00 : f32
    %63 = vector.broadcast %cst_31 : f32 to vector<8x32xf32>
    %64 = arith.addf %63, %62 : vector<8x32xf32>
    %65 = arith.divf %63, %64 : vector<8x32xf32>
    %66 = vector.extract_strided_slice %47 {offsets = [0, 256], sizes = [8, 32], strides = [1, 1]} : vector<8x384xf32> to vector<8x32xf32>
    %67 = vector.extract_strided_slice %49 {offsets = [0, 256], sizes = [8, 32], strides = [1, 1]} : vector<8x384xf32> to vector<8x32xf32>
    %c0_32 = arith.constant 0 : index
    %c0_33 = arith.constant 0 : index
    %68 = vector.load %arg10[%c0_32, %c0_33] : memref<1x32xf32, #tpu.memory_space<vmem>>, vector<1x32xf32>
    %69 = vector.broadcast %68 : vector<1x32xf32> to vector<8x32xf32>
    %70 = arith.addf %67, %69 : vector<8x32xf32>
    %71 = arith.mulf %57, %70 : vector<8x32xf32>
    %72 = arith.addf %66, %71 : vector<8x32xf32>
    %73 = math.tanh %72 : vector<8x32xf32>
    %cst_34 = arith.constant 1.000000e+00 : f32
    %74 = vector.broadcast %cst_34 : f32 to vector<8x32xf32>
    %75 = arith.subf %74, %65 : vector<8x32xf32>
    %76 = arith.mulf %75, %73 : vector<8x32xf32>
    %77 = arith.mulf %65, %44 : vector<8x32xf32>
    %78 = arith.addf %76, %77 : vector<8x32xf32>
    %c1_i32 = arith.constant 1 : i32
    %79 = arith.index_cast %c1_i32 : i32 to index
    %c0_35 = arith.constant 0 : index
    %c0_36 = arith.constant 0 : index
    %80 = vector.load %arg15[%79, %c0_35, %c0_36] : memref<8x8x384xf32, #tpu.memory_space<vmem>>, vector<1x8x384xf32>
    %81 = vector.shape_cast %80 : vector<1x8x384xf32> to vector<8x384xf32>
    %c0_37 = arith.constant 0 : index
    %c0_38 = arith.constant 0 : index
    %82 = vector.load %arg9[%c0_37, %c0_38] : memref<32x384xf32, #tpu.memory_space<vmem>>, vector<32x384xf32>
    %cst_39 = arith.constant dense<0.000000e+00> : vector<8x384xf32>
    %83 = tpu.matmul %78, %82, %cst_39 {dimension_numbers = #tpu.dot_dimension_numbers<[1], [0], [0], [1], [0, 0, 1, 1], [], []>} : vector<8x32xf32>, vector<32x384xf32>, vector<8x384xf32> -> vector<8x384xf32>
    %84 = vector.extract_strided_slice %81 {offsets = [0, 0], sizes = [8, 32], strides = [1, 1]} : vector<8x384xf32> to vector<8x32xf32>
    %85 = vector.extract_strided_slice %83 {offsets = [0, 0], sizes = [8, 32], strides = [1, 1]} : vector<8x384xf32> to vector<8x32xf32>
    %86 = arith.addf %84, %85 : vector<8x32xf32>
    %87 = arith.negf %86 : vector<8x32xf32>
    %88 = math.exp %87 : vector<8x32xf32>
    %cst_40 = arith.constant 1.000000e+00 : f32
    %89 = vector.broadcast %cst_40 : f32 to vector<8x32xf32>
    %90 = arith.addf %89, %88 : vector<8x32xf32>
    %91 = arith.divf %89, %90 : vector<8x32xf32>
    %92 = vector.extract_strided_slice %81 {offsets = [0, 128], sizes = [8, 32], strides = [1, 1]} : vector<8x384xf32> to vector<8x32xf32>
    %93 = vector.extract_strided_slice %83 {offsets = [0, 128], sizes = [8, 32], strides = [1, 1]} : vector<8x384xf32> to vector<8x32xf32>
    %94 = arith.addf %92, %93 : vector<8x32xf32>
    %95 = arith.negf %94 : vector<8x32xf32>
    %96 = math.exp %95 : vector<8x32xf32>
    %cst_41 = arith.constant 1.000000e+00 : f32
    %97 = vector.broadcast %cst_41 : f32 to vector<8x32xf32>
    %98 = arith.addf %97, %96 : vector<8x32xf32>
    %99 = arith.divf %97, %98 : vector<8x32xf32>
    %100 = vector.extract_strided_slice %81 {offsets = [0, 256], sizes = [8, 32], strides = [1, 1]} : vector<8x384xf32> to vector<8x32xf32>
    %101 = vector.extract_strided_slice %83 {offsets = [0, 256], sizes = [8, 32], strides = [1, 1]} : vector<8x384xf32> to vector<8x32xf32>
    %c0_42 = arith.constant 0 : index
    %c0_43 = arith.constant 0 : index
    %102 = vector.load %arg10[%c0_42, %c0_43] : memref<1x32xf32, #tpu.memory_space<vmem>>, vector<1x32xf32>
    %103 = vector.broadcast %102 : vector<1x32xf32> to vector<8x32xf32>
    %104 = arith.addf %101, %103 : vector<8x32xf32>
    %105 = arith.mulf %91, %104 : vector<8x32xf32>
    %106 = arith.addf %100, %105 : vector<8x32xf32>
    %107 = math.tanh %106 : vector<8x32xf32>
    %cst_44 = arith.constant 1.000000e+00 : f32
    %108 = vector.broadcast %cst_44 : f32 to vector<8x32xf32>
    %109 = arith.subf %108, %99 : vector<8x32xf32>
    %110 = arith.mulf %109, %107 : vector<8x32xf32>
    %111 = arith.mulf %99, %78 : vector<8x32xf32>
    %112 = arith.addf %110, %111 : vector<8x32xf32>
    %c2_i32 = arith.constant 2 : i32
    %113 = arith.index_cast %c2_i32 : i32 to index
    %c0_45 = arith.constant 0 : index
    %c0_46 = arith.constant 0 : index
    %114 = vector.load %arg15[%113, %c0_45, %c0_46] : memref<8x8x384xf32, #tpu.memory_space<vmem>>, vector<1x8x384xf32>
    %115 = vector.shape_cast %114 : vector<1x8x384xf32> to vector<8x384xf32>
    %c0_47 = arith.constant 0 : index
    %c0_48 = arith.constant 0 : index
    %116 = vector.load %arg9[%c0_47, %c0_48] : memref<32x384xf32, #tpu.memory_space<vmem>>, vector<32x384xf32>
    %cst_49 = arith.constant dense<0.000000e+00> : vector<8x384xf32>
    %117 = tpu.matmul %112, %116, %cst_49 {dimension_numbers = #tpu.dot_dimension_numbers<[1], [0], [0], [1], [0, 0, 1, 1], [], []>} : vector<8x32xf32>, vector<32x384xf32>, vector<8x384xf32> -> vector<8x384xf32>
    %118 = vector.extract_strided_slice %115 {offsets = [0, 0], sizes = [8, 32], strides = [1, 1]} : vector<8x384xf32> to vector<8x32xf32>
    %119 = vector.extract_strided_slice %117 {offsets = [0, 0], sizes = [8, 32], strides = [1, 1]} : vector<8x384xf32> to vector<8x32xf32>
    %120 = arith.addf %118, %119 : vector<8x32xf32>
    %121 = arith.negf %120 : vector<8x32xf32>
    %122 = math.exp %121 : vector<8x32xf32>
    %cst_50 = arith.constant 1.000000e+00 : f32
    %123 = vector.broadcast %cst_50 : f32 to vector<8x32xf32>
    %124 = arith.addf %123, %122 : vector<8x32xf32>
    %125 = arith.divf %123, %124 : vector<8x32xf32>
    %126 = vector.extract_strided_slice %115 {offsets = [0, 128], sizes = [8, 32], strides = [1, 1]} : vector<8x384xf32> to vector<8x32xf32>
    %127 = vector.extract_strided_slice %117 {offsets = [0, 128], sizes = [8, 32], strides = [1, 1]} : vector<8x384xf32> to vector<8x32xf32>
    %128 = arith.addf %126, %127 : vector<8x32xf32>
    %129 = arith.negf %128 : vector<8x32xf32>
    %130 = math.exp %129 : vector<8x32xf32>
    %cst_51 = arith.constant 1.000000e+00 : f32
    %131 = vector.broadcast %cst_51 : f32 to vector<8x32xf32>
    %132 = arith.addf %131, %130 : vector<8x32xf32>
    %133 = arith.divf %131, %132 : vector<8x32xf32>
    %134 = vector.extract_strided_slice %115 {offsets = [0, 256], sizes = [8, 32], strides = [1, 1]} : vector<8x384xf32> to vector<8x32xf32>
    %135 = vector.extract_strided_slice %117 {offsets = [0, 256], sizes = [8, 32], strides = [1, 1]} : vector<8x384xf32> to vector<8x32xf32>
    %c0_52 = arith.constant 0 : index
    %c0_53 = arith.constant 0 : index
    %136 = vector.load %arg10[%c0_52, %c0_53] : memref<1x32xf32, #tpu.memory_space<vmem>>, vector<1x32xf32>
    %137 = vector.broadcast %136 : vector<1x32xf32> to vector<8x32xf32>
    %138 = arith.addf %135, %137 : vector<8x32xf32>
    %139 = arith.mulf %125, %138 : vector<8x32xf32>
    %140 = arith.addf %134, %139 : vector<8x32xf32>
    %141 = math.tanh %140 : vector<8x32xf32>
    %cst_54 = arith.constant 1.000000e+00 : f32
    %142 = vector.broadcast %cst_54 : f32 to vector<8x32xf32>
    %143 = arith.subf %142, %133 : vector<8x32xf32>
    %144 = arith.mulf %143, %141 : vector<8x32xf32>
    %145 = arith.mulf %133, %112 : vector<8x32xf32>
    %146 = arith.addf %144, %145 : vector<8x32xf32>
    %c3_i32 = arith.constant 3 : i32
    %147 = arith.index_cast %c3_i32 : i32 to index
    %c0_55 = arith.constant 0 : index
    %c0_56 = arith.constant 0 : index
    %148 = vector.load %arg15[%147, %c0_55, %c0_56] : memref<8x8x384xf32, #tpu.memory_space<vmem>>, vector<1x8x384xf32>
    %149 = vector.shape_cast %148 : vector<1x8x384xf32> to vector<8x384xf32>
    %c0_57 = arith.constant 0 : index
    %c0_58 = arith.constant 0 : index
    %150 = vector.load %arg9[%c0_57, %c0_58] : memref<32x384xf32, #tpu.memory_space<vmem>>, vector<32x384xf32>
    %cst_59 = arith.constant dense<0.000000e+00> : vector<8x384xf32>
    %151 = tpu.matmul %146, %150, %cst_59 {dimension_numbers = #tpu.dot_dimension_numbers<[1], [0], [0], [1], [0, 0, 1, 1], [], []>} : vector<8x32xf32>, vector<32x384xf32>, vector<8x384xf32> -> vector<8x384xf32>
    %152 = vector.extract_strided_slice %149 {offsets = [0, 0], sizes = [8, 32], strides = [1, 1]} : vector<8x384xf32> to vector<8x32xf32>
    %153 = vector.extract_strided_slice %151 {offsets = [0, 0], sizes = [8, 32], strides = [1, 1]} : vector<8x384xf32> to vector<8x32xf32>
    %154 = arith.addf %152, %153 : vector<8x32xf32>
    %155 = arith.negf %154 : vector<8x32xf32>
    %156 = math.exp %155 : vector<8x32xf32>
    %cst_60 = arith.constant 1.000000e+00 : f32
    %157 = vector.broadcast %cst_60 : f32 to vector<8x32xf32>
    %158 = arith.addf %157, %156 : vector<8x32xf32>
    %159 = arith.divf %157, %158 : vector<8x32xf32>
    %160 = vector.extract_strided_slice %149 {offsets = [0, 128], sizes = [8, 32], strides = [1, 1]} : vector<8x384xf32> to vector<8x32xf32>
    %161 = vector.extract_strided_slice %151 {offsets = [0, 128], sizes = [8, 32], strides = [1, 1]} : vector<8x384xf32> to vector<8x32xf32>
    %162 = arith.addf %160, %161 : vector<8x32xf32>
    %163 = arith.negf %162 : vector<8x32xf32>
    %164 = math.exp %163 : vector<8x32xf32>
    %cst_61 = arith.constant 1.000000e+00 : f32
    %165 = vector.broadcast %cst_61 : f32 to vector<8x32xf32>
    %166 = arith.addf %165, %164 : vector<8x32xf32>
    %167 = arith.divf %165, %166 : vector<8x32xf32>
    %168 = vector.extract_strided_slice %149 {offsets = [0, 256], sizes = [8, 32], strides = [1, 1]} : vector<8x384xf32> to vector<8x32xf32>
    %169 = vector.extract_strided_slice %151 {offsets = [0, 256], sizes = [8, 32], strides = [1, 1]} : vector<8x384xf32> to vector<8x32xf32>
    %c0_62 = arith.constant 0 : index
    %c0_63 = arith.constant 0 : index
    %170 = vector.load %arg10[%c0_62, %c0_63] : memref<1x32xf32, #tpu.memory_space<vmem>>, vector<1x32xf32>
    %171 = vector.broadcast %170 : vector<1x32xf32> to vector<8x32xf32>
    %172 = arith.addf %169, %171 : vector<8x32xf32>
    %173 = arith.mulf %159, %172 : vector<8x32xf32>
    %174 = arith.addf %168, %173 : vector<8x32xf32>
    %175 = math.tanh %174 : vector<8x32xf32>
    %cst_64 = arith.constant 1.000000e+00 : f32
    %176 = vector.broadcast %cst_64 : f32 to vector<8x32xf32>
    %177 = arith.subf %176, %167 : vector<8x32xf32>
    %178 = arith.mulf %177, %175 : vector<8x32xf32>
    %179 = arith.mulf %167, %146 : vector<8x32xf32>
    %180 = arith.addf %178, %179 : vector<8x32xf32>
    %c4_i32 = arith.constant 4 : i32
    %181 = arith.index_cast %c4_i32 : i32 to index
    %c0_65 = arith.constant 0 : index
    %c0_66 = arith.constant 0 : index
    %182 = vector.load %arg15[%181, %c0_65, %c0_66] : memref<8x8x384xf32, #tpu.memory_space<vmem>>, vector<1x8x384xf32>
    %183 = vector.shape_cast %182 : vector<1x8x384xf32> to vector<8x384xf32>
    %c0_67 = arith.constant 0 : index
    %c0_68 = arith.constant 0 : index
    %184 = vector.load %arg9[%c0_67, %c0_68] : memref<32x384xf32, #tpu.memory_space<vmem>>, vector<32x384xf32>
    %cst_69 = arith.constant dense<0.000000e+00> : vector<8x384xf32>
    %185 = tpu.matmul %180, %184, %cst_69 {dimension_numbers = #tpu.dot_dimension_numbers<[1], [0], [0], [1], [0, 0, 1, 1], [], []>} : vector<8x32xf32>, vector<32x384xf32>, vector<8x384xf32> -> vector<8x384xf32>
    %186 = vector.extract_strided_slice %183 {offsets = [0, 0], sizes = [8, 32], strides = [1, 1]} : vector<8x384xf32> to vector<8x32xf32>
    %187 = vector.extract_strided_slice %185 {offsets = [0, 0], sizes = [8, 32], strides = [1, 1]} : vector<8x384xf32> to vector<8x32xf32>
    %188 = arith.addf %186, %187 : vector<8x32xf32>
    %189 = arith.negf %188 : vector<8x32xf32>
    %190 = math.exp %189 : vector<8x32xf32>
    %cst_70 = arith.constant 1.000000e+00 : f32
    %191 = vector.broadcast %cst_70 : f32 to vector<8x32xf32>
    %192 = arith.addf %191, %190 : vector<8x32xf32>
    %193 = arith.divf %191, %192 : vector<8x32xf32>
    %194 = vector.extract_strided_slice %183 {offsets = [0, 128], sizes = [8, 32], strides = [1, 1]} : vector<8x384xf32> to vector<8x32xf32>
    %195 = vector.extract_strided_slice %185 {offsets = [0, 128], sizes = [8, 32], strides = [1, 1]} : vector<8x384xf32> to vector<8x32xf32>
    %196 = arith.addf %194, %195 : vector<8x32xf32>
    %197 = arith.negf %196 : vector<8x32xf32>
    %198 = math.exp %197 : vector<8x32xf32>
    %cst_71 = arith.constant 1.000000e+00 : f32
    %199 = vector.broadcast %cst_71 : f32 to vector<8x32xf32>
    %200 = arith.addf %199, %198 : vector<8x32xf32>
    %201 = arith.divf %199, %200 : vector<8x32xf32>
    %202 = vector.extract_strided_slice %183 {offsets = [0, 256], sizes = [8, 32], strides = [1, 1]} : vector<8x384xf32> to vector<8x32xf32>
    %203 = vector.extract_strided_slice %185 {offsets = [0, 256], sizes = [8, 32], strides = [1, 1]} : vector<8x384xf32> to vector<8x32xf32>
    %c0_72 = arith.constant 0 : index
    %c0_73 = arith.constant 0 : index
    %204 = vector.load %arg10[%c0_72, %c0_73] : memref<1x32xf32, #tpu.memory_space<vmem>>, vector<1x32xf32>
    %205 = vector.broadcast %204 : vector<1x32xf32> to vector<8x32xf32>
    %206 = arith.addf %203, %205 : vector<8x32xf32>
    %207 = arith.mulf %193, %206 : vector<8x32xf32>
    %208 = arith.addf %202, %207 : vector<8x32xf32>
    %209 = math.tanh %208 : vector<8x32xf32>
    %cst_74 = arith.constant 1.000000e+00 : f32
    %210 = vector.broadcast %cst_74 : f32 to vector<8x32xf32>
    %211 = arith.subf %210, %201 : vector<8x32xf32>
    %212 = arith.mulf %211, %209 : vector<8x32xf32>
    %213 = arith.mulf %201, %180 : vector<8x32xf32>
    %214 = arith.addf %212, %213 : vector<8x32xf32>
    %c5_i32 = arith.constant 5 : i32
    %215 = arith.index_cast %c5_i32 : i32 to index
    %c0_75 = arith.constant 0 : index
    %c0_76 = arith.constant 0 : index
    %216 = vector.load %arg15[%215, %c0_75, %c0_76] : memref<8x8x384xf32, #tpu.memory_space<vmem>>, vector<1x8x384xf32>
    %217 = vector.shape_cast %216 : vector<1x8x384xf32> to vector<8x384xf32>
    %c0_77 = arith.constant 0 : index
    %c0_78 = arith.constant 0 : index
    %218 = vector.load %arg9[%c0_77, %c0_78] : memref<32x384xf32, #tpu.memory_space<vmem>>, vector<32x384xf32>
    %cst_79 = arith.constant dense<0.000000e+00> : vector<8x384xf32>
    %219 = tpu.matmul %214, %218, %cst_79 {dimension_numbers = #tpu.dot_dimension_numbers<[1], [0], [0], [1], [0, 0, 1, 1], [], []>} : vector<8x32xf32>, vector<32x384xf32>, vector<8x384xf32> -> vector<8x384xf32>
    %220 = vector.extract_strided_slice %217 {offsets = [0, 0], sizes = [8, 32], strides = [1, 1]} : vector<8x384xf32> to vector<8x32xf32>
    %221 = vector.extract_strided_slice %219 {offsets = [0, 0], sizes = [8, 32], strides = [1, 1]} : vector<8x384xf32> to vector<8x32xf32>
    %222 = arith.addf %220, %221 : vector<8x32xf32>
    %223 = arith.negf %222 : vector<8x32xf32>
    %224 = math.exp %223 : vector<8x32xf32>
    %cst_80 = arith.constant 1.000000e+00 : f32
    %225 = vector.broadcast %cst_80 : f32 to vector<8x32xf32>
    %226 = arith.addf %225, %224 : vector<8x32xf32>
    %227 = arith.divf %225, %226 : vector<8x32xf32>
    %228 = vector.extract_strided_slice %217 {offsets = [0, 128], sizes = [8, 32], strides = [1, 1]} : vector<8x384xf32> to vector<8x32xf32>
    %229 = vector.extract_strided_slice %219 {offsets = [0, 128], sizes = [8, 32], strides = [1, 1]} : vector<8x384xf32> to vector<8x32xf32>
    %230 = arith.addf %228, %229 : vector<8x32xf32>
    %231 = arith.negf %230 : vector<8x32xf32>
    %232 = math.exp %231 : vector<8x32xf32>
    %cst_81 = arith.constant 1.000000e+00 : f32
    %233 = vector.broadcast %cst_81 : f32 to vector<8x32xf32>
    %234 = arith.addf %233, %232 : vector<8x32xf32>
    %235 = arith.divf %233, %234 : vector<8x32xf32>
    %236 = vector.extract_strided_slice %217 {offsets = [0, 256], sizes = [8, 32], strides = [1, 1]} : vector<8x384xf32> to vector<8x32xf32>
    %237 = vector.extract_strided_slice %219 {offsets = [0, 256], sizes = [8, 32], strides = [1, 1]} : vector<8x384xf32> to vector<8x32xf32>
    %c0_82 = arith.constant 0 : index
    %c0_83 = arith.constant 0 : index
    %238 = vector.load %arg10[%c0_82, %c0_83] : memref<1x32xf32, #tpu.memory_space<vmem>>, vector<1x32xf32>
    %239 = vector.broadcast %238 : vector<1x32xf32> to vector<8x32xf32>
    %240 = arith.addf %237, %239 : vector<8x32xf32>
    %241 = arith.mulf %227, %240 : vector<8x32xf32>
    %242 = arith.addf %236, %241 : vector<8x32xf32>
    %243 = math.tanh %242 : vector<8x32xf32>
    %cst_84 = arith.constant 1.000000e+00 : f32
    %244 = vector.broadcast %cst_84 : f32 to vector<8x32xf32>
    %245 = arith.subf %244, %235 : vector<8x32xf32>
    %246 = arith.mulf %245, %243 : vector<8x32xf32>
    %247 = arith.mulf %235, %214 : vector<8x32xf32>
    %248 = arith.addf %246, %247 : vector<8x32xf32>
    %c6_i32 = arith.constant 6 : i32
    %249 = arith.index_cast %c6_i32 : i32 to index
    %c0_85 = arith.constant 0 : index
    %c0_86 = arith.constant 0 : index
    %250 = vector.load %arg15[%249, %c0_85, %c0_86] : memref<8x8x384xf32, #tpu.memory_space<vmem>>, vector<1x8x384xf32>
    %251 = vector.shape_cast %250 : vector<1x8x384xf32> to vector<8x384xf32>
    %c0_87 = arith.constant 0 : index
    %c0_88 = arith.constant 0 : index
    %252 = vector.load %arg9[%c0_87, %c0_88] : memref<32x384xf32, #tpu.memory_space<vmem>>, vector<32x384xf32>
    %cst_89 = arith.constant dense<0.000000e+00> : vector<8x384xf32>
    %253 = tpu.matmul %248, %252, %cst_89 {dimension_numbers = #tpu.dot_dimension_numbers<[1], [0], [0], [1], [0, 0, 1, 1], [], []>} : vector<8x32xf32>, vector<32x384xf32>, vector<8x384xf32> -> vector<8x384xf32>
    %254 = vector.extract_strided_slice %251 {offsets = [0, 0], sizes = [8, 32], strides = [1, 1]} : vector<8x384xf32> to vector<8x32xf32>
    %255 = vector.extract_strided_slice %253 {offsets = [0, 0], sizes = [8, 32], strides = [1, 1]} : vector<8x384xf32> to vector<8x32xf32>
    %256 = arith.addf %254, %255 : vector<8x32xf32>
    %257 = arith.negf %256 : vector<8x32xf32>
    %258 = math.exp %257 : vector<8x32xf32>
    %cst_90 = arith.constant 1.000000e+00 : f32
    %259 = vector.broadcast %cst_90 : f32 to vector<8x32xf32>
    %260 = arith.addf %259, %258 : vector<8x32xf32>
    %261 = arith.divf %259, %260 : vector<8x32xf32>
    %262 = vector.extract_strided_slice %251 {offsets = [0, 128], sizes = [8, 32], strides = [1, 1]} : vector<8x384xf32> to vector<8x32xf32>
    %263 = vector.extract_strided_slice %253 {offsets = [0, 128], sizes = [8, 32], strides = [1, 1]} : vector<8x384xf32> to vector<8x32xf32>
    %264 = arith.addf %262, %263 : vector<8x32xf32>
    %265 = arith.negf %264 : vector<8x32xf32>
    %266 = math.exp %265 : vector<8x32xf32>
    %cst_91 = arith.constant 1.000000e+00 : f32
    %267 = vector.broadcast %cst_91 : f32 to vector<8x32xf32>
    %268 = arith.addf %267, %266 : vector<8x32xf32>
    %269 = arith.divf %267, %268 : vector<8x32xf32>
    %270 = vector.extract_strided_slice %251 {offsets = [0, 256], sizes = [8, 32], strides = [1, 1]} : vector<8x384xf32> to vector<8x32xf32>
    %271 = vector.extract_strided_slice %253 {offsets = [0, 256], sizes = [8, 32], strides = [1, 1]} : vector<8x384xf32> to vector<8x32xf32>
    %c0_92 = arith.constant 0 : index
    %c0_93 = arith.constant 0 : index
    %272 = vector.load %arg10[%c0_92, %c0_93] : memref<1x32xf32, #tpu.memory_space<vmem>>, vector<1x32xf32>
    %273 = vector.broadcast %272 : vector<1x32xf32> to vector<8x32xf32>
    %274 = arith.addf %271, %273 : vector<8x32xf32>
    %275 = arith.mulf %261, %274 : vector<8x32xf32>
    %276 = arith.addf %270, %275 : vector<8x32xf32>
    %277 = math.tanh %276 : vector<8x32xf32>
    %cst_94 = arith.constant 1.000000e+00 : f32
    %278 = vector.broadcast %cst_94 : f32 to vector<8x32xf32>
    %279 = arith.subf %278, %269 : vector<8x32xf32>
    %280 = arith.mulf %279, %277 : vector<8x32xf32>
    %281 = arith.mulf %269, %248 : vector<8x32xf32>
    %282 = arith.addf %280, %281 : vector<8x32xf32>
    %c7_i32 = arith.constant 7 : i32
    %283 = arith.index_cast %c7_i32 : i32 to index
    %c0_95 = arith.constant 0 : index
    %c0_96 = arith.constant 0 : index
    %284 = vector.load %arg15[%283, %c0_95, %c0_96] : memref<8x8x384xf32, #tpu.memory_space<vmem>>, vector<1x8x384xf32>
    %285 = vector.shape_cast %284 : vector<1x8x384xf32> to vector<8x384xf32>
    %c0_97 = arith.constant 0 : index
    %c0_98 = arith.constant 0 : index
    %286 = vector.load %arg9[%c0_97, %c0_98] : memref<32x384xf32, #tpu.memory_space<vmem>>, vector<32x384xf32>
    %cst_99 = arith.constant dense<0.000000e+00> : vector<8x384xf32>
    %287 = tpu.matmul %282, %286, %cst_99 {dimension_numbers = #tpu.dot_dimension_numbers<[1], [0], [0], [1], [0, 0, 1, 1], [], []>} : vector<8x32xf32>, vector<32x384xf32>, vector<8x384xf32> -> vector<8x384xf32>
    %288 = vector.extract_strided_slice %285 {offsets = [0, 0], sizes = [8, 32], strides = [1, 1]} : vector<8x384xf32> to vector<8x32xf32>
    %289 = vector.extract_strided_slice %287 {offsets = [0, 0], sizes = [8, 32], strides = [1, 1]} : vector<8x384xf32> to vector<8x32xf32>
    %290 = arith.addf %288, %289 : vector<8x32xf32>
    %291 = arith.negf %290 : vector<8x32xf32>
    %292 = math.exp %291 : vector<8x32xf32>
    %cst_100 = arith.constant 1.000000e+00 : f32
    %293 = vector.broadcast %cst_100 : f32 to vector<8x32xf32>
    %294 = arith.addf %293, %292 : vector<8x32xf32>
    %295 = arith.divf %293, %294 : vector<8x32xf32>
    %296 = vector.extract_strided_slice %285 {offsets = [0, 128], sizes = [8, 32], strides = [1, 1]} : vector<8x384xf32> to vector<8x32xf32>
    %297 = vector.extract_strided_slice %287 {offsets = [0, 128], sizes = [8, 32], strides = [1, 1]} : vector<8x384xf32> to vector<8x32xf32>
    %298 = arith.addf %296, %297 : vector<8x32xf32>
    %299 = arith.negf %298 : vector<8x32xf32>
    %300 = math.exp %299 : vector<8x32xf32>
    %cst_101 = arith.constant 1.000000e+00 : f32
    %301 = vector.broadcast %cst_101 : f32 to vector<8x32xf32>
    %302 = arith.addf %301, %300 : vector<8x32xf32>
    %303 = arith.divf %301, %302 : vector<8x32xf32>
    %304 = vector.extract_strided_slice %285 {offsets = [0, 256], sizes = [8, 32], strides = [1, 1]} : vector<8x384xf32> to vector<8x32xf32>
    %305 = vector.extract_strided_slice %287 {offsets = [0, 256], sizes = [8, 32], strides = [1, 1]} : vector<8x384xf32> to vector<8x32xf32>
    %c0_102 = arith.constant 0 : index
    %c0_103 = arith.constant 0 : index
    %306 = vector.load %arg10[%c0_102, %c0_103] : memref<1x32xf32, #tpu.memory_space<vmem>>, vector<1x32xf32>
    %307 = vector.broadcast %306 : vector<1x32xf32> to vector<8x32xf32>
    %308 = arith.addf %305, %307 : vector<8x32xf32>
    %309 = arith.mulf %295, %308 : vector<8x32xf32>
    %310 = arith.addf %304, %309 : vector<8x32xf32>
    %311 = math.tanh %310 : vector<8x32xf32>
    %cst_104 = arith.constant 1.000000e+00 : f32
    %312 = vector.broadcast %cst_104 : f32 to vector<8x32xf32>
    %313 = arith.subf %312, %303 : vector<8x32xf32>
    %314 = arith.mulf %313, %311 : vector<8x32xf32>
    %315 = arith.mulf %303, %282 : vector<8x32xf32>
    %316 = arith.addf %314, %315 : vector<8x32xf32>
    %c8_i32 = arith.constant 8 : i32
    %cst_105 = arith.constant dense<0.000000e+00> : vector<8xf32>
    %317 = vector.multi_reduction <add>, %316, %cst_105 [1] : vector<8x32xf32> to vector<8xf32>
    %318 = vector.shape_cast %317 : vector<8xf32> to vector<8x1xf32>
    %cst_106 = arith.constant 3.200000e+01 : f32
    %319 = vector.broadcast %cst_106 : f32 to vector<8x1xf32>
    %320 = arith.divf %318, %319 : vector<8x1xf32>
    %321 = vector.broadcast %320 : vector<8x1xf32> to vector<8x32xf32>
    %322 = arith.subf %316, %321 : vector<8x32xf32>
    %323 = arith.mulf %322, %322 : vector<8x32xf32>
    %cst_107 = arith.constant dense<0.000000e+00> : vector<8xf32>
    %324 = vector.multi_reduction <add>, %323, %cst_107 [1] : vector<8x32xf32> to vector<8xf32>
    %325 = vector.shape_cast %324 : vector<8xf32> to vector<8x1xf32>
    %cst_108 = arith.constant 3.200000e+01 : f32
    %326 = vector.broadcast %cst_108 : f32 to vector<8x1xf32>
    %327 = arith.divf %325, %326 : vector<8x1xf32>
    %328 = vector.broadcast %320 : vector<8x1xf32> to vector<8x32xf32>
    %329 = arith.subf %316, %328 : vector<8x32xf32>
    %cst_109 = arith.constant 9.99999974E-6 : f32
    %330 = vector.broadcast %cst_109 : f32 to vector<8x1xf32>
    %331 = arith.addf %327, %330 : vector<8x1xf32>
    %332 = math.rsqrt %331 : vector<8x1xf32>
    %333 = vector.broadcast %332 : vector<8x1xf32> to vector<8x32xf32>
    %334 = arith.mulf %329, %333 : vector<8x32xf32>
    %c0_110 = arith.constant 0 : index
    %c0_111 = arith.constant 0 : index
    %335 = vector.load %arg11[%c0_110, %c0_111] : memref<1x32xf32, #tpu.memory_space<vmem>>, vector<1x32xf32>
    %336 = vector.broadcast %335 : vector<1x32xf32> to vector<8x32xf32>
    %337 = arith.mulf %334, %336 : vector<8x32xf32>
    %c0_112 = arith.constant 0 : index
    %c0_113 = arith.constant 0 : index
    %338 = vector.load %arg12[%c0_112, %c0_113] : memref<1x32xf32, #tpu.memory_space<vmem>>, vector<1x32xf32>
    %339 = vector.broadcast %338 : vector<1x32xf32> to vector<8x32xf32>
    %340 = arith.addf %337, %339 : vector<8x32xf32>
    %c0_114 = arith.constant 0 : index
    %341 = memref.load %arg13[%c0_114] : memref<1xf32, #tpu.memory_space<smem>>
    %342 = vector.broadcast %341 : f32 to vector<8x32xf32>
    %343 = arith.mulf %342, %37 : vector<8x32xf32>
    %cst_115 = arith.constant 1.000000e+00 : f32
    %344 = arith.subf %cst_115, %341 : f32
    %345 = vector.broadcast %344 : f32 to vector<8x32xf32>
    %346 = arith.mulf %345, %340 : vector<8x32xf32>
    %347 = arith.addf %343, %346 : vector<8x32xf32>
    %c0_116 = arith.constant 0 : index
    %c0_117 = arith.constant 0 : index
    %348 = vector.load %arg14[%c0_116, %c0_117] : memref<8x32xf32, #tpu.memory_space<vmem>>, vector<8x32xf32>
    tpu.vector_store %arg14[%c0_116, %c0_117], %347 {strides = array<i32>} : memref<8x32xf32, #tpu.memory_space<vmem>>, vector<8x32xf32>,
    return
  }
  func.func @transform_0(%arg0: i32) -> (i32, i32, i32) {
    %c0_i32 = arith.constant 0 : i32
    %c0_i32_0 = arith.constant 0 : i32
    %c0_i32_1 = arith.constant 0 : i32
    return %c0_i32, %arg0, %c0_i32_0 : i32, i32, i32
  }
  func.func @transform_1(%arg0: i32) -> (i32, i32, i32) {
    %c0_i32 = arith.constant 0 : i32
    %c0_i32_0 = arith.constant 0 : i32
    %c0_i32_1 = arith.constant 0 : i32
    return %c0_i32, %arg0, %c0_i32_0 : i32, i32, i32
  }
  func.func @transform_2(%arg0: i32) -> (i32, i32) {
    %c0_i32 = arith.constant 0 : i32
    %c0_i32_0 = arith.constant 0 : i32
    %c0_i32_1 = arith.constant 0 : i32
    return %c0_i32, %c0_i32_0 : i32, i32
  }
  func.func @transform_3(%arg0: i32) -> (i32, i32) {
    %c0_i32 = arith.constant 0 : i32
    %c0_i32_0 = arith.constant 0 : i32
    %c0_i32_1 = arith.constant 0 : i32
    return %c0_i32, %c0_i32_0 : i32, i32
  }
  func.func @transform_4(%arg0: i32) -> (i32, i32) {
    %c0_i32 = arith.constant 0 : i32
    %c0_i32_0 = arith.constant 0 : i32
    %c0_i32_1 = arith.constant 0 : i32
    return %c0_i32, %c0_i32_0 : i32, i32
  }
  func.func @transform_5(%arg0: i32) -> (i32, i32) {
    %c0_i32 = arith.constant 0 : i32
    %c0_i32_0 = arith.constant 0 : i32
    %c0_i32_1 = arith.constant 0 : i32
    return %c0_i32, %c0_i32_0 : i32, i32
  }
  func.func @transform_6(%arg0: i32) -> i32 {
    %c0_i32 = arith.constant 0 : i32
    %c0_i32_0 = arith.constant 0 : i32
    return %c0_i32 : i32
  }
  func.func @transform_7(%arg0: i32) -> (i32, i32) {
    %c0_i32 = arith.constant 0 : i32
    %c0_i32_0 = arith.constant 0 : i32
    %c0_i32_1 = arith.constant 0 : i32
    return %c0_i32, %c0_i32_0 : i32, i32
  }
  func.func @transform_8(%arg0: i32) -> (i32, i32) {
    %c0_i32 = arith.constant 0 : i32
    %c0_i32_0 = arith.constant 0 : i32
    %c0_i32_1 = arith.constant 0 : i32
    return %c0_i32, %c0_i32_0 : i32, i32
  }
  func.func @transform_9(%arg0: i32) -> (i32, i32) {
    %c0_i32 = arith.constant 0 : i32
    %c0_i32_0 = arith.constant 0 : i32
    %c0_i32_1 = arith.constant 0 : i32
    return %c0_i32, %c0_i32_0 : i32, i32
  }
  func.func @transform_10(%arg0: i32) -> (i32, i32) {
    %c0_i32 = arith.constant 0 : i32
    %c0_i32_0 = arith.constant 0 : i32
    %c0_i32_1 = arith.constant 0 : i32
    return %c0_i32, %c0_i32_0 : i32, i32
  }
  func.func @transform_11(%arg0: i32) -> (i32, i32) {
    %c0_i32 = arith.constant 0 : i32
    %c0_i32_0 = arith.constant 0 : i32
    %c0_i32_1 = arith.constant 0 : i32
    return %c0_i32, %c0_i32_0 : i32, i32
  }
  func.func @transform_12(%arg0: i32) -> i32 {
    %c0_i32 = arith.constant 0 : i32
    %c0_i32_0 = arith.constant 0 : i32
    return %c0_i32 : i32
  }
  func.func @transform_13(%arg0: i32) -> (i32, i32) {
    %c0_i32 = arith.constant 0 : i32
    %c0_i32_0 = arith.constant 0 : i32
    return %arg0, %c0_i32 : i32, i32
  }
}

</mosaic_0001>

<bundles_post_ra>
// kernel: tpu_custom_call.1
= control target key start
LH: loop header
LB: loop body
LE: loop exit
PB: predicated region body
PF: predicated region fallthrough
CT: control target
= control target key end

     0   :  { %s4069_s0 = inlined_call_operand.vmem [shape: f32[8,16,32], index: 0, kind: input, shape index: {}]   ;;  %s4070_s1 = inlined_call_operand.vmem [shape: f32[8,16,1], index: 1, kind: input, shape index: {}]   ;;  %s4071_s2 = inlined_call_operand.vmem [shape: f32[1,32], index: 2, kind: input, shape index: {}]   ;;  %s4072_s3 = inlined_call_operand.hbm [shape: f32[32,512], index: 3, kind: input, shape index: {}]   ;;  %s4073_s4 = inlined_call_operand.vmem [shape: f32[1,16], index: 4, kind: input, shape index: {}]   ;;  %s4074_s5 = inlined_call_operand.vmem [shape: f32[1,16], index: 5, kind: input, shape index: {}]   ;;  %s4075_s6 = inlined_call_operand.<no memory space> [shape: f32[1], index: 6, kind: input, shape index: {}]   ;;  %s4076_s7 = inlined_call_operand.vmem [shape: f32[1,384], index: 7, kind: input, shape index: {}]   ;;  %s4077_s8 = inlined_call_operand.hbm [shape: f32[32,384], index: 8, kind: input, shape index: {}]   ;;  %s4078_s9 = inlined_call_operand.vmem [shape: f32[1,32], index: 9, kind: input, shape index: {}]   ;;  %s4079_s10 = inlined_call_operand.vmem [shape: f32[1,32], index: 10, kind: input, shape index: {}]   ;;  %s4080_s11 = inlined_call_operand.vmem [shape: f32[1,32], index: 11, kind: input, shape index: {}]   ;;  %s4081_s12 = inlined_call_operand.<no memory space> [shape: f32[1], index: 12, kind: input, shape index: {}]   ;;  %s4082_s13 = inlined_call_operand.hbm [shape: f32[16,32], index: 13, kind: output, shape index: {}]  }
   0x1   :  { %4093 = sst [smem:[#allocation21_spill]] %s4082_s13 }
   0x2   :  { %18 = sst [smem:[#allocation3]] %s4075_s6 }
   0x3   :  { %19 = sst [smem:[#allocation4]] %s4081_s12 }
   0x4   :  { %20 = vsyncpa [#allocation8], 0 }
   0x5   :  { %21 = vsyncpa [#allocation11], 0 }
   0x6   :  { %22 = vsyncpa [#allocation9], 0 }
   0x7   :  { %24 = vsyncpa [#allocation9 + $0x1], 0  ;;  %s3467_s29 = smov 0   ;;  %s3469_s30 = smov 0  }
   0x8   :  { %s3471_s14 = smov 0   ;;  %s3473_s15 = smov 0  }
   0x9 LB: > { %4094 = sst [smem:[#allocation16_spill]] %s3366_s29  ;;  %s3488_s6 = sadd.s32 4294967295, %s3378_s15   ;;  %s3378_s15 = sphi %s3473_s15, %s4118_s15   ;;  %s3374_s14 = sphi %s3471_s14, %s4122_s14   ;;  %s3370_s30 = sphi %s3469_s30, %s4121_s30   ;;  %s3366_s29 = sphi %s3467_s29, %s4120_s29  }
   0xa   : > { %s2739_s12 = sadd.s32 4294967294, %s3378_s15   ;;  %s3492_s16 = sadd.s32 1, %s3378_s15  }
   0xb   : > { %4095 = sst [smem:[#allocation17_spill]] %s3492_s16  ;;  %s37_s17 = sadd.s32 1, %s3374_s14 }
   0xc   : > { %s34_s18 = ssub.s32 %s3378_s15, %s3492_s16  ;;  %p44_p0 = scmp.ne.s32.totalorder %s3374_s14, %s3370_s30 }
   0xd   : > { %p35_p1 = scmp.eq.s32.totalorder %s34_s18, 0  ;;  %p45_p2 = scmp.eq.s32.totalorder %s3378_s15, 0 }
   0xe   : > { %p331_p3 = scmp.eq.s32.totalorder %s3488_s6, 1  ;;  %p336_p4 = scmp.ne.s32.totalorder %s3370_s30, %s3366_s29 }
   0xf   : > { %s3504_s19 = scalar_select %p35_p1, %s3374_s14, %s37_s17  }
  0x10   : > { %p3506_p5 = por %p45_p2, %p44_p0  ;;  %p3510_p6 = por %p331_p3, %p44_p0 }
  0x11   : > { %4096 = sst [smem:[#allocation18_spill]] %s3504_s19  ;;  %p337_p7 = scmp.eq.s32.totalorder %s2739_s12, 1 }
  0x12   : > { %s4097_s20 = scalar_select %p3506_p5, 1, 0 }
  0x13   : > { %s4098_s21 = scalar_select %p3510_p6, 1, 0 }
  0x14   : > { %p2740_p8 = scmp.ge.s32.totalorder %s3378_s15, 1  ;;  %p344_p9 = scmp.lt.s32.totalorder %s3378_s15, 3 }
  0x15   : > { %4099 = sst [smem:[#allocation19_spill]] %s4098_s21  ;;  %p3516_p10 = por %p337_p7, %p336_p4 }
  0x16   : > { %p4086_p11 = scmp.eq.s32.totalorder %s3488_s6, 0  ;;  %p3521_p12 = pnand %p2740_p8, %p344_p9 }
  0x17   : > { %s4100_s22 = scalar_select %p3516_p10, 1, 0 }
  0x18   : > { %s4102_s23 = scalar_select %p3521_p12, 1, 0 }
  0x19   : > { %4101 = sst [smem:[#allocation20_spill]] %s4100_s22  ;;  %s3380_s24 = smov [#allocation7]  }
  0x1a   : > { %s359_s25 = sshll.u32 %s3380_s24, 4  ;;  %p3076_p13 = pneg %p3521_p12  ;;  %s360_s25 = int_to_ptr.vmem [resolvable:$true] %s359_s25 }
  0x1b   : > { %s3381_s27 = smov [#allocation10]   ;;  %s3252_s18 = scalar_lea.hbm %s4072_s3, 2048 }
  0x1c   : > { %p3529_p0 = pnand %p4086_p11, %p3076_p13  ;;  %s384_s28 = sshll.u32 %s3381_s27, 4  ;;  %s3533_s28 = int_to_ptr.vmem [resolvable:$true] %s384_s28 }
  0x1d   : > { %p3253_p1 = scmp.ne.s32.totalorder %s4072_s3, %s3252_s18  ;;  %p3259_p7 = scmp.lt.u32.totalorder %s3252_s18, %s4072_s3 }
  0x1e   : > { %p3254_p2 = pneg %p3529_p0 }
  0x20   : > { %p3255_p3 = pnand %p3254_p2, %p3253_p1 }
  0x22   : > { %p3256_p4 = pneg %p3255_p3 }
  0x24   : > { %p3261_p8 = pnand %p3259_p7, %p3256_p4 }
  0x26   : > { %3264 = shalt.err (!%p3261_p8)
}
  0x27   : > { %s3265_s27 = scalar_lea.vmem %s360_s25, 2048  ;;  %p3273_p10 = scmp.lt.s32.totalorder %s360_s25, %s360_s25 }
  0x28   : > { %p3266_p9 = scmp.ne.s32.totalorder %s360_s25, %s3265_s27  ;;  %p3274_p6 = scmp.lt.s32.totalorder %s3265_s27, %s3265_s27 }
  0x2a   : > { %p3268_p13 = pnand %p3266_p9, %p3254_p2  ;;  %p3275_p12 = por %p3274_p6, %p3273_p10 }
  0x2c   : > { %p3269_p11 = pneg %p3268_p13 }
  0x2e   : > { %p3276_p5 = pnand %p3275_p12, %p3269_p11 }
  0x30   : > { %3279 = shalt.err (!%p3276_p5)
}
  0x31   : > { %s3382_s19 = smov 512   ;;  %s3383_s12 = smov 32  }
  0x32   : > { %3079 = dma.hbm_to_vmem [thread:$0]  (!%p3529_p0), %s4072_s3, 2048, %s360_s25, [#allocation8], %s3382_s19, %s3382_s19, %s3383_s12  }
  0x33   : > { %s3280_s24 = scalar_lea.hbm %s4077_s8, 1536 }
  0x34   : > { %p3281_p1 = scmp.ne.s32.totalorder %s4077_s8, %s3280_s24  ;;  %p3287_p10 = scmp.lt.u32.totalorder %s3280_s24, %s4077_s8 }
  0x36   : > { %p3283_p5 = pnand %p3281_p1, %p3254_p2 }
  0x38   : > { %p3284_p6 = pneg %p3283_p5 }
  0x3a   : > { %p3289_p11 = pnand %p3287_p10, %p3284_p6 }
  0x3c   : > { %3292 = shalt.err (!%p3289_p11)
}
  0x3d   : > { %s3293_s25 = scalar_lea.vmem %s3533_s28, 1536  ;;  %p3301_p7 = scmp.lt.s32.totalorder %s3533_s28, %s3533_s28 }
  0x3e   : > { %p3294_p12 = scmp.ne.s32.totalorder %s3533_s28, %s3293_s25  ;;  %p3302_p8 = scmp.lt.s32.totalorder %s3293_s25, %s3293_s25 }
  0x40   : > { %p3296_p3 = pnand %p3294_p12, %p3254_p2  ;;  %p3303_p9 = por %p3302_p8, %p3301_p7 }
  0x42   : > { %p3297_p4 = pneg %p3296_p3 }
  0x44   : > { %p3304_p13 = pnand %p3303_p9, %p3297_p4 }
  0x46   : > { %3307 = shalt.err (!%p3304_p13)
}
  0x47   : > { %s3384_s13 = smov 384   ;;  %s3385_s29 = smov 24  }
  0x48   : > { %3082 = dma.hbm_to_vmem [thread:$0]  (!%p3529_p0), %s4077_s8, 1536, %s3533_s28, [#allocation11], %s3384_s13, %s3384_s13, %s3385_s29  }
  0x49   : > { %p2743_p1 = scmp.ge.s32.totalorder %s3378_s15, 2 }
  0x4a   : > { %p4104_p2 = scmp.ne.s32.totalorder (!%p2743_p1), %s4097_s20, 0 }
  0x4b   : > { %406 = sbr.rel (%p2743_p1) target bundleno = 99 (0x63), region = 60 }
  0x52   : > { %409 = sbr.rel (!%p4104_p2) target bundleno = 90 (0x5a), region = 64  ;;  %s411_s12 = sand.u32 (%p4104_p2), 1, %s3374_s14  }
  0x53   : > { %s2745_s16 = sshll.u32 (%p4104_p2), %s3378_s15, 3  ;;  %s2744_s22 = sshll.u32 (%p4104_p2), %s411_s12, 6 }
  0x54   : > { %s415_s26 = scalar_lea.vmem (%p4104_p2), %s4069_s0, %s2745_s16  ;;  %s413_s28 = scalar_lea.vmem (%p4104_p2), [#allocation5], %s2744_s22 }
  0x55   : > { %v457_v0 = vld [vmem:[%s415_s26] sm:$0xff] (%p4104_p2)  ;;  %v459_v1 = vld [vmem:[%s415_s26 + $0x10] sm:$0xff] (%p4104_p2) }
  0x56   : > { %v461_v2 = vld [vmem:[%s415_s26 + $0x20] sm:$0xff] (%p4104_p2)  ;;  %458 = vst [vmem:[%s413_s28] sm:$0xff] (%p4104_p2), %v457_v0  ;;  %460 = vst [vmem:[%s413_s28 + $0x8] sm:$0xff] (%p4104_p2), %v459_v1  ;;  %v463_v3 = vld [vmem:[%s415_s26 + $0x30] sm:$0xff] (%p4104_p2) }
  0x57   : > { %462 = vst [vmem:[%s413_s28 + $0x10] sm:$0xff] (%p4104_p2), %v461_v2  ;;  %v465_v4 = vld [vmem:[%s415_s26 + $0x40] sm:$0xff] (%p4104_p2)  ;;  %v467_v5 = vld [vmem:[%s415_s26 + $0x50] sm:$0xff] (%p4104_p2)  ;;  %464 = vst [vmem:[%s413_s28 + $0x18] sm:$0xff] (%p4104_p2), %v463_v3 }
  0x58   : > { %466 = vst [vmem:[%s413_s28 + $0x20] sm:$0xff] (%p4104_p2), %v465_v4  ;;  %468 = vst [vmem:[%s413_s28 + $0x28] sm:$0xff] (%p4104_p2), %v467_v5  ;;  %v469_v6 = vld [vmem:[%s415_s26 + $0x60] sm:$0xff] (%p4104_p2)  ;;  %v471_v7 = vld [vmem:[%s415_s26 + $0x70] sm:$0xff] (%p4104_p2) }
  0x59   : > { %470 = vst [vmem:[%s413_s28 + $0x30] sm:$0xff] %v469_v6  ;;  %472 = vst [vmem:[%s413_s28 + $0x38] sm:$0xff] %v471_v7 }
  0x5a PF: > { %p4105_p0 = scmp.ne.s32.totalorder %s4097_s20, 0 }
  0x5b   : > { %s480_s24 = sand.u32 (%p4105_p0), 1, %s3374_s14   ;;  %s2747_s27 = sshll.u32 (%p4105_p0), %s3378_s15, 3 }
  0x5c   : > { %478 = sbr.rel (!%p4105_p0) target bundleno = 99 (0x63), region = 102  ;;  %s2746_s25 = sshll.u32 (%p4105_p0), %s480_s24, 6 }
  0x5d   : > { %s484_s21 = scalar_lea.vmem (%p4105_p0), %s4070_s1, %s2747_s27  ;;  %s482_s19 = scalar_lea.vmem (%p4105_p0), [#allocation6], %s2746_s25 }
  0x5e   : > { %v526_v8 = vld [vmem:[%s484_s21] sm:$0xff] (%p4105_p0)  ;;  %v528_v9 = vld [vmem:[%s484_s21 + $0x10] sm:$0xff] (%p4105_p0) }
  0x5f   : > { %v530_v10 = vld [vmem:[%s484_s21 + $0x20] sm:$0xff] (%p4105_p0)  ;;  %527 = vst [vmem:[%s482_s19] sm:$0xff] (%p4105_p0), %v526_v8  ;;  %529 = vst [vmem:[%s482_s19 + $0x8] sm:$0xff] (%p4105_p0), %v528_v9  ;;  %v532_v11 = vld [vmem:[%s484_s21 + $0x30] sm:$0xff] (%p4105_p0) }
  0x60   : > { %531 = vst [vmem:[%s482_s19 + $0x10] sm:$0xff] (%p4105_p0), %v530_v10  ;;  %v534_v12 = vld [vmem:[%s484_s21 + $0x40] sm:$0xff] (%p4105_p0)  ;;  %v536_v13 = vld [vmem:[%s484_s21 + $0x50] sm:$0xff] (%p4105_p0)  ;;  %533 = vst [vmem:[%s482_s19 + $0x18] sm:$0xff] (%p4105_p0), %v532_v11 }
  0x61   : > { %535 = vst [vmem:[%s482_s19 + $0x20] sm:$0xff] (%p4105_p0), %v534_v12  ;;  %537 = vst [vmem:[%s482_s19 + $0x28] sm:$0xff] (%p4105_p0), %v536_v13  ;;  %v538_v14 = vld [vmem:[%s484_s21 + $0x60] sm:$0xff] (%p4105_p0)  ;;  %v540_v15 = vld [vmem:[%s484_s21 + $0x70] sm:$0xff] (%p4105_p0) }
  0x62   : > { %539 = vst [vmem:[%s482_s19 + $0x30] sm:$0xff] (%p4105_p0), %v538_v14  ;;  %541 = vst [vmem:[%s482_s19 + $0x38] sm:$0xff] (%p4105_p0), %v540_v15 }
  0x63 PF: > { %p4106_p5 = scmp.ne.s32.totalorder %s4102_s23, 0 }
  0x64   : > { %s3602_s20 = sand.u32 (!%p4106_p5), 1, %s3370_s30   ;;  %p4107_p6 = scmp.eq.s32.totalorder (!%p4106_p5), %s3488_s6, 0 }
  0x65   : > { %550 = sbr.rel (%p4106_p5) target bundleno = 2685 (0xa7d), region = 140  ;;  %s2749_s12 = sshll.u32 (!%p4106_p5), %s3602_s20, 6 }
  0x66   : > { %s3605_s16 = scalar_lea.vmem (!%p4106_p5), [#allocation5], %s2749_s12  ;;  %s3607_s22 = scalar_lea.vmem (!%p4106_p5), [#allocation6], %s2749_s12 }
  0x6c   : > { %3353 = dma.done.wait (%p4107_p6), [#allocation8], 2048   ;;  %p4108_p10 = pmov %p4107_p6 }
  0x6d   : > { %p4109_p11 = pmov %p4107_p6 }
  0x6e   : > { %3355 = vsyncadd (%p4108_p10), [#allocation8], 4294965248 }
  0x6f   : > { %3357 = dma.done.wait (%p4109_p11), [#allocation11], 1536   ;;  %p4110_p12 = pmov %p4107_p6 }
  0x70   : > { %v3386_v16 = vmov 0   ;;  %v616_v17 = vld [vmem:[%s3607_s22 + $0x8] sm:$0xff]  ;;  %v615_v18 = vld [vmem:[%s3607_s22] sm:$0xff]  ;;  %v617_v21 = vld [vmem:[%s3607_s22 + $0x10] sm:$0xff]  ;;  %v3387_v46 = vmov 0.0   ;;  %v3388_v61 = vmov 0.0|0.0  }
  0x71   : > { %3359 = vsyncadd (%p4110_p12), [#allocation11], 4294965760  ;;  %3135 = vset.pattern.permute.xlu1 %v3386_v16  ;;  %3134 = vset.pattern.permute.xlu0 %v3386_v16  ;;  %v681_v19 = vsub.f32 1.0, %v616_v17  ;;  %v680_v20 = vsub.f32 1.0, %v615_v18  ;;  %v751_v22 = vld [vmem:[#allocation7 + $0x8] sm:$0xff]  ;;  %v750_v25 = vld [vmem:[#allocation7] sm:$0xff] }
  0x72   : > { %638 = vperm.xlu1 %3135, %v616_v17   ;;  %633 = vperm.xlu0 %3134, %v615_v18   ;;  %v755_v23 = vld [vmem:[#allocation7 + $0x28] sm:$0xff]  ;;  %v754_v26 = vld [vmem:[#allocation7 + $0x20] sm:$0xff]  ;;  %v753_v27 = vld [vmem:[#allocation7 + $0x18] sm:$0xff]  ;;  %v682_v28 = vsub.f32 1.0, %v617_v21  ;;  %vm766_vm0 = vcmask 261120   ;;  %vm3389_vm1 = vmmov 0  }
  0x73   : > { %v2938_v24 = vpack.c.bf16 %v755_v23, %v751_v22  ;;  %v2940_v29 = vpack.c.bf16 %v754_v26, %v750_v25  ;;  %v757_v30 = vld [vmem:[#allocation7 + $0x38] sm:$0xff]  ;;  %v752_v31 = vld [vmem:[#allocation7 + $0x10] sm:$0xff]  ;;  %v759_v36 = vld [vmem:[#allocation7 + $0x48] sm:$0xff]  ;;  %855 = vmatprep.mubr.f32.mxu0 %v3387_v46  ;;  %968 = vmatprep.mubr.f32.mxu1 %v3387_v46  ;;  %vm1055_vm2 = vcmask 130048   ;;  %s1080_s21 = sld [smem:[#allocation3]]  ;;  %s4111_s26 = sld [smem:[#allocation19_spill]] }
  0x74   : > { %v756_v32 = vld [vmem:[#allocation7 + $0x30] sm:$0xff]  ;;  %v618_v33 = vld [vmem:[%s3607_s22 + $0x18] sm:$0xff]  ;;  %v2946_v34 = vpack.c.bf16 %v757_v30, %v753_v27  ;;  %v763_v37 = vld [vmem:[#allocation7 + $0x68] sm:$0xff]  ;;  %s2612_s19 = sld [smem:[#allocation4]]  ;;  %s2807_s28 = sshll.u32 %s3488_s6, 7 }
  0x75   : > { %2939 = vmatprep.subr.bf16.mxu0 %v2938_v24  ;;  %v2948_v35 = vpack.c.bf16 %v756_v32, %v752_v31  ;;  %v2942_v38 = vpack.c.bf16 %v763_v37, %v759_v36  ;;  %v758_v39 = vld [vmem:[#allocation7 + $0x40] sm:$0xff]  ;;  %v761_v41 = vld [vmem:[#allocation7 + $0x58] sm:$0xff]  ;;  %v760_v44 = vld [vmem:[#allocation7 + $0x50] sm:$0xff]  ;;  %v683_v47 = vsub.f32 1.0, %v618_v33  ;;  %s4112_s29 = sld [smem:[#allocation21_spill]]  ;;  %s3390_s6 = smov [#allocation12]  }
  0x76   : > { %701 = vperm.xlu1 %3135, %v681_v19   ;;  %696 = vperm.xlu0 %3134, %v680_v20   ;;  %v762_v40 = vld [vmem:[#allocation7 + $0x60] sm:$0xff]  ;;  %v765_v43 = vld [vmem:[#allocation7 + $0x78] sm:$0xff]  ;;  %v764_v45 = vld [vmem:[#allocation7 + $0x70] sm:$0xff] }
  0x77   : > { %2941 = vmatpush1.bf16.msra.mxu0 %v2940_v29  ;;  %2947 = vmatprep.subr.bf16.mxu1 %v2946_v34  ;;  %v2944_v42 = vpack.c.bf16 %v762_v40, %v758_v39  ;;  %v2950_v48 = vpack.c.bf16 %v765_v43, %v761_v41  ;;  %v1208_v49 = vld [vmem:[#allocation10 + $0x8] sm:$0xff]  ;;  %v1211_v50 = vld [vmem:[#allocation10 + $0x20] sm:$0xff]  ;;  %v2952_v52 = vpack.c.bf16 %v764_v45, %v760_v44  ;;  %v621_v57 = vld [vmem:[%s3607_s22 + $0x30] sm:$0xff] }
  0x78   : > { %v619_v51 = vld [vmem:[%s3607_s22 + $0x20] sm:$0xff]  ;;  %2949 = vmatpush1.bf16.msra.mxu1 %v2948_v35  ;;  %2943 = vmatprep.subr.bf16.mxu0 %v2942_v38  ;;  %v3623_v53 = vpack.c.bf16 %v1211_v50, %v1208_v49  ;;  %v620_v55 = vld [vmem:[%s3607_s22 + $0x28] sm:$0xff]  ;;  %v686_v58 = vsub.f32 1.0, %v621_v57  ;;  %v622_v59 = vld [vmem:[%s3607_s22 + $0x38] sm:$0xff]  ;;  %s2753_s22 = sshll.u32 %s3602_s20, 3 }
  0x79   : > { %2951 = vmatprep.subr.bf16.mxu1 %v2950_v48  ;;  %v684_v54 = vsub.f32 1.0, %v619_v51  ;;  %v685_v56 = vsub.f32 1.0, %v620_v55  ;;  %v687_v60 = vsub.f32 1.0, %v622_v59  ;;  %v623_v0 = vld [vmem:[%s3605_s16] sm:$0xff]  ;;  %v1210_v3 = vld [vmem:[#allocation10 + $0x18] sm:$0xff]  ;;  %v624_v4 = vld [vmem:[%s3605_s16 + $0x8] sm:$0xff] }
  0x7a   : > { %706 = vperm.xlu1 %3135, %v682_v28   ;;  %643 = vperm.xlu0 %3134, %v617_v21   ;;  %v3635_v1 = vld [vmem:[%s4071_s2] ss:$0 sm:$0xff]  ;;  %v1214_v7 = vld [vmem:[#allocation10 + $0x38] sm:$0xff]  ;;  %v1217_v8 = vld [vmem:[#allocation10 + $0x50] sm:$0xff]  ;;  %s2615_s23 = ssub.f32 1.0, %s2612_s19  ;;  %s614_s24 = scalar_lea.vmem [#allocation12], %s2753_s22 }
  0x7b   : > { %2945 = vmatpush1.bf16.msra.mxu0 %v2944_v42  ;;  %v1207_v2 = vld [vmem:[#allocation10] sm:$0xff]  ;;  %v1209_v11 = vld [vmem:[#allocation10 + $0x10] sm:$0xff]  ;;  %v1212_v12 = vld [vmem:[#allocation10 + $0x28] sm:$0xff]  ;;  %v3644_v17 = vpack.c.bf16 %v1217_v8, %v1214_v7  ;;  %s2634_s27 = sshll.u32 %s614_s24, 4  ;;  %s4024_s12 = scalar_lea.hbm %s4112_s29, %s2807_s28  ;;  %s4026_s27 = int_to_ptr.vmem [resolvable:$true] %s2634_s27 }
  0x7c   : > { %2955 = vmatprep.subr.bf16.mxu0 %v3623_v53  ;;  %2953 = vmatpush1.bf16.msra.mxu1 %v2952_v52  ;;  %v3639_v13 = vpack.c.bf16 %v1210_v3, %v1207_v2  ;;  %v1213_v18 = vld [vmem:[#allocation10 + $0x30] sm:$0xff]  ;;  %v1216_v19 = vld [vmem:[#allocation10 + $0x48] sm:$0xff]  ;;  %v3647_v23 = vpack.c.bf16 %v1212_v12, %v1209_v11  ;;  %v1215_v24 = vld [vmem:[#allocation10 + $0x40] sm:$0xff]  ;;  %p4114_p4 = scmp.ne.s32.totalorder %s4111_s26, 0  ;;  %s3312_s22 = sshll.u32 %s3390_s6, 4  ;;  %s3313_s22 = int_to_ptr.vmem [resolvable:$false] %s3312_s22 }
  0x7d   : > { %2962 = vmatprep.subr.bf16.mxu1 %v3388_v61  ;;  %v625_v21 = vld [vmem:[%s3605_s16 + $0x10] sm:$0xff]  ;;  %v1218_v25 = vld [vmem:[#allocation10 + $0x58] sm:$0xff]  ;;  %v3655_v26 = vpack.c.bf16 %v1216_v19, %v1213_v18  ;;  %v627_v38 = vld [vmem:[%s3605_s16 + $0x20] sm:$0xff]  ;;  %p3315_p9 = scmp.lt.s32.totalorder %s4026_s27, %s3313_s22 }
  0x7e   : > { %711 = vperm.xlu1 %3135, %v683_v47   ;;  %648 = vperm.xlu0 %3134, %v618_v33   ;;  %v626_v31 = vld [vmem:[%s3605_s16 + $0x18] sm:$0xff]  ;;  %v3664_v33 = vpack.c.bf16 %v1218_v25, %v1215_v24  ;;  %v628_v44 = vld [vmem:[%s3605_s16 + $0x28] sm:$0xff]  ;;  %v3751_v3 = vld [vmem:[%s4073_s4] ss:$0 sm:$0xff] }
  0x7f   : > { %v1139_v7 = vld [vmem:[%s4076_s7] sm:$0x7] }
  0x82   : > { %716 = vperm.xlu1 %3135, %v684_v54   ;;  %653 = vperm.xlu0 %3134, %v619_v51   ;;  %v629_v51 = vld [vmem:[%s3605_s16 + $0x30] sm:$0xff] }
  0x86   : > { %721 = vperm.xlu1 %3135, %v685_v56   ;;  %658 = vperm.xlu0 %3134, %v620_v55  }
  0x8a   : > { %726 = vperm.xlu1 %3135, %v686_v58   ;;  %663 = vperm.xlu0 %3134, %v621_v57   ;;  %v630_v58 = vld [vmem:[%s3605_s16 + $0x38] sm:$0xff]  ;;  %s3308_s16 = scalar_lea.vmem %s4026_s27, 128 }
  0x8b   : > { %p3309_p3 = scmp.ne.s32.totalorder %s4026_s27, %s3308_s16 }
  0x8d   : > { %p3310_p7 = pnand %p3309_p3, %p4114_p4 }
  0x8e   : > { %731 = vperm.xlu1 %3135, %v687_v60   ;;  %668 = vperm.xlu0 %3134, %v622_v59  }
  0x8f   : > { %p3311_p8 = pneg %p3310_p7 }
  0xf1   : > { %v639_v62 = vpop.permute.xlu1 %638  ;;  %v634_v63 = vpop.permute.xlu0 %633 }
  0xf2   : > { %v671_v9 = vmul.f32 %v634_v63, %v623_v0  ;;  %v672_v14 = vmul.f32 %v639_v62, %v624_v4 }
  0xf5   : > { %v702_v5 = vpop.permute.xlu1 %701  ;;  %v697_v6 = vpop.permute.xlu0 %696 }
  0xf6   : > { %v734_v10 = vmul.f32 %v3635_v1, %v697_v6  ;;  %v735_v15 = vmul.f32 %v3635_v1, %v702_v5 }
  0xf8   : > { %v3642_v16 = vadd.f32 %v734_v10, %v671_v9  ;;  %v3657_v27 = vadd.f32 %v735_v15, %v672_v14 }
  0xf9   : > { %v707_v20 = vpop.permute.xlu1 %706  ;;  %v644_v22 = vpop.permute.xlu0 %643 }
  0xfa   : > { %2755 = vmatmul.mubr.msk.f32.vlgmr.msra.gmra.mrb[0].mxu0 %vm766_vm0, %v3642_v16  ;;  %2763 = vmatmul.mubr.msk.f32.vlgmr.msra.gmra.mrb[0].mxu1 %vm766_vm0, %v3642_v16  ;;  %v736_v28 = vmul.f32 %v3635_v1, %v707_v20  ;;  %v673_v29 = vmul.f32 %v644_v22, %v625_v21 }
  0xfb   : > { %2957 = vmatpush1.bf16.msra.mxu0 %v3639_v13  ;;  %861 = vmatprep.mubr.f32.mxu0 %v3387_v46 }
  0xfc   : > { %974 = vmatprep.mubr.f32.mxu1 %v3387_v46  ;;  %2959 = vmatprep.subr.bf16.mxu0 %v3644_v17  ;;  %v3672_v34 = vadd.f32 %v736_v28, %v673_v29 }
  0xfd   : > { %v712_v30 = vpop.permute.xlu1 %711  ;;  %v649_v32 = vpop.permute.xlu0 %648  ;;  %2964 = vmatpush3.bf16.msra.mxu1 %v3647_v23 }
  0xfe   : > { %2756 = vmatmul.mubr.msk.f32.gmra.mrb[2].mxu0 %vm766_vm0, %v3657_v27  ;;  %2764 = vmatmul.mubr.msk.f32.gmra.mrb[2].mxu1 %vm766_vm0, %v3657_v27  ;;  %v737_v35 = vmul.f32 %v3635_v1, %v712_v30  ;;  %v674_v36 = vmul.f32 %v649_v32, %v626_v31 }
  0xff   : > { %867 = vmatprep.mubr.f32.mxu0 %v3387_v46  ;;  %980 = vmatprep.mubr.f32.mxu1 %v3387_v46 }
 0x100   : > { %2961 = vmatpush1.bf16.msra.mxu0 %v3655_v26  ;;  %2965 = vmatprep.subr.bf16.mxu1 %v3388_v61  ;;  %v3686_v40 = vadd.f32 %v737_v35, %v674_v36 }
 0x101   : > { %v717_v37 = vpop.permute.xlu1 %716  ;;  %v654_v39 = vpop.permute.xlu0 %653  ;;  %2967 = vmatpush3.bf16.msra.mxu1 %v3664_v33  ;;  %2969 = vmatprep.subr.bf16.mxu0 %v3623_v53 }
 0x102   : > { %2757 = vmatmul.mubr.msk.f32.gmra.mrb[4].mxu0 %vm766_vm0, %v3672_v34  ;;  %2765 = vmatmul.mubr.msk.f32.gmra.mrb[4].mxu1 %vm766_vm0, %v3672_v34  ;;  %v738_v41 = vmul.f32 %v3635_v1, %v717_v37  ;;  %v675_v42 = vmul.f32 %v654_v39, %v627_v38 }
 0x103   : > { %873 = vmatprep.mubr.f32.mxu0 %v3387_v46  ;;  %986 = vmatprep.mubr.f32.mxu1 %v3387_v46 }
 0x104   : > { %2976 = vmatprep.subr.bf16.mxu1 %v3388_v61  ;;  %v3697_v47 = vadd.f32 %v738_v41, %v675_v42  ;;  %v3792_v41 = vld [vmem:[%s4074_s5] ss:$0 sm:$0xff] }
 0x105   : > { %v722_v43 = vpop.permute.xlu1 %721  ;;  %v659_v45 = vpop.permute.xlu0 %658 }
 0x106   : > { %2758 = vmatmul.mubr.msk.f32.gmra.mrb[6].mxu0 %vm766_vm0, %v3686_v40  ;;  %2766 = vmatmul.mubr.msk.f32.gmra.mrb[6].mxu1 %vm766_vm0, %v3686_v40  ;;  %v739_v48 = vmul.f32 %v3635_v1, %v722_v43  ;;  %v676_v49 = vmul.f32 %v659_v45, %v628_v44 }
 0x107   : > { %879 = vmatprep.mubr.f32.mxu0 %v3387_v46  ;;  %992 = vmatprep.mubr.f32.mxu1 %v3387_v46 }
 0x108   : > { %v3707_v54 = vadd.f32 %v739_v48, %v676_v49 }
 0x109   : > { %v727_v50 = vpop.permute.xlu1 %726  ;;  %v664_v52 = vpop.permute.xlu0 %663 }
 0x10a   : > { %2759 = vmatmul.mubr.msk.f32.gmra.mrb[8].mxu0 %vm766_vm0, %v3697_v47  ;;  %2767 = vmatmul.mubr.msk.f32.gmra.mrb[8].mxu1 %vm766_vm0, %v3697_v47  ;;  %v740_v55 = vmul.f32 %v3635_v1, %v727_v50  ;;  %v677_v56 = vmul.f32 %v664_v52, %v629_v51 }
 0x10b   : > { %885 = vmatprep.mubr.f32.mxu0 %v3387_v46  ;;  %998 = vmatprep.mubr.f32.mxu1 %v3387_v46 }
 0x10c   : > { %v3717_v60 = vadd.f32 %v740_v55, %v677_v56 }
 0x10d   : > { %v732_v57 = vpop.permute.xlu1 %731  ;;  %v669_v59 = vpop.permute.xlu0 %668 }
 0x10e   : > { %2760 = vmatmul.mubr.msk.f32.gmra.mrb[10].mxu0 %vm766_vm0, %v3707_v54  ;;  %2768 = vmatmul.mubr.msk.f32.gmra.mrb[10].mxu1 %vm766_vm0, %v3707_v54  ;;  %v741_v62 = vmul.f32 %v3635_v1, %v732_v57  ;;  %v678_v63 = vmul.f32 %v669_v59, %v630_v58  ;;  %v1141_v1 = vlaneseq }
 0x10f   : > { %891 = vmatprep.mubr.f32.mxu0 %v3387_v46  ;;  %1004 = vmatprep.mubr.f32.mxu1 %v3387_v46 }
 0x110   : > { %v3726_v0 = vadd.f32 %v741_v62, %v678_v63  ;;  %v1142_v2 = vshrl.u32 %v1141_v1, 7 }
 0x112   : > { %2761 = vmatmul.mubr.msk.f32.gmra.mrb[12].mxu0 %vm766_vm0, %v3717_v60  ;;  %2769 = vmatmul.mubr.msk.f32.gmra.mrb[12].mxu1 %vm766_vm0, %v3717_v60  ;;  %v1147_v4 = vsub.s32 1, %v1142_v2  ;;  %v1143_v8 = vsub.s32 0, %v1142_v2  ;;  %v1151_v9 = vsub.s32 2, %v1142_v2 }
 0x113   : > { %897 = vmatprep.mubr.f32.mxu0 %v3387_v46  ;;  %1010 = vmatprep.mubr.f32.mxu1 %v3387_v46 }
 0x114   : > { %v3763_v14 = vrot.slane %v1139_v7, %v1147_v4  ;;  %v3765_v15 = vrot.slane %v1139_v7, %v1143_v8  ;;  %v3767_v18 = vrot.slane %v1139_v7, %v1151_v9 }
 0x116   : > { %2762 = vmatmul.mubr.msk.f32.gmra.mrb[14].mxu0 %vm766_vm0, %v3726_v0  ;;  %2770 = vmatmul.mubr.msk.f32.gmra.mrb[14].mxu1 %vm766_vm0, %v3726_v0 }
 0x117   : > { %1286 = vmatprep.mubr.f32.mxu0 %v3387_v46  ;;  %2858 = vmatprep.mubr.msk.f32.mxu1 %vm3389_vm1, %v3387_v46 }
 0x11a   : > { %1287 = vmatmul.mubr.f32.vlgmr.msra.gmra.mrb[16].mxu0 %v3387_v46  ;;  %2859 = vmatmul.mubr.f32.vlgmr.msra.gmra.mrb[16].mxu1 %v3387_v46 }
 0x11b   : > { %2971 = vmatpush1.bf16.msra.mxu0 %v3639_v13  ;;  %2978 = vmatpush3.bf16.msra.mxu1 %v3647_v23 }
 0x11c   : > { %2973 = vmatprep.subr.bf16.mxu0 %v3644_v17  ;;  %2979 = vmatprep.subr.bf16.mxu1 %v3388_v61 }
 0x11d   : > { %1463 = vmatprep.mubr.f32.mxu0 %v3387_v46  ;;  %2869 = vmatprep.mubr.msk.f32.mxu1 %vm3389_vm1, %v3387_v46 }
 0x11f   : > { %2975 = vmatpush1.bf16.msra.mxu0 %v3655_v26  ;;  %2981 = vmatpush3.bf16.msra.mxu1 %v3664_v33 }
 0x120   : > { %2983 = vmatprep.subr.bf16.mxu0 %v3623_v53  ;;  %2990 = vmatprep.subr.bf16.mxu1 %v3388_v61 }
 0x1cd   : > { %v857_v5 = vpop.f32.mrb[0].mxu0  ;;  %v3753_v6 = vpop.f32.mrb[0].mxu1 }
 0x1ce   : > { %v1024_v10 = vadd.f32 %v3751_v3, %v857_v5  ;;  %v3759_v11 = vpop.f32.mrb[1].mxu0  ;;  %v3761_v12 = vpop.f32.mrb[1].mxu1 }
 0x1d0   : > { %3136 = vtanh.f32 %v1024_v10 }
 0x1d1   : > { %v863_v19 = vpop.f32.mrb[2].mxu0  ;;  %v976_v20 = vpop.f32.mrb[2].mxu1 }
 0x1d2   : > { %v1025_v21 = vadd.f32 %v3751_v3, %v863_v19  ;;  %v3771_v22 = vadd.f32 %v3763_v14, %v976_v20  ;;  %v865_v24 = vpop.f32.mrb[3].mxu0  ;;  %v978_v25 = vpop.f32.mrb[3].mxu1 }
 0x1d3   : > { %v3774_v28 = vadd.f32 %v3765_v15, %v865_v24  ;;  %v3777_v29 = vadd.f32 %v3767_v18, %v978_v25 }
 0x1d4   : > { %3138 = vtanh.f32 %v1025_v21 }
 0x1d5   : > { %v869_v30 = vpop.f32.mrb[4].mxu0  ;;  %v982_v31 = vpop.f32.mrb[4].mxu1 }
 0x1d6   : > { %v1026_v32 = vadd.f32 %v3751_v3, %v869_v30  ;;  %v3781_v35 = vadd.f32 %v3763_v14, %v982_v31  ;;  %v871_v36 = vpop.f32.mrb[5].mxu0  ;;  %v984_v37 = vpop.f32.mrb[5].mxu1 }
 0x1d7   : > { %v3784_v38 = vadd.f32 %v3765_v15, %v871_v36  ;;  %v3787_v39 = vadd.f32 %v3767_v18, %v984_v37 }
 0x1d8   : > { %3140 = vtanh.f32 %v1026_v32 }
 0x1d9   : > { %v875_v42 = vpop.f32.mrb[6].mxu0  ;;  %v988_v43 = vpop.f32.mrb[6].mxu1 }
 0x1da   : > { %v3137_v44 = vpop.eup %3136  ;;  %v1027_v45 = vadd.f32 %v3751_v3, %v875_v42  ;;  %v3796_v48 = vadd.f32 %v3763_v14, %v988_v43  ;;  %v877_v49 = vpop.f32.mrb[7].mxu0 }
 0x1db   : > { %v990_v50 = vpop.f32.mrb[7].mxu1  ;;  %v3799_v51 = vadd.f32 %v3765_v15, %v877_v49  ;;  %v1047_v55 = vmul.f32 %v3137_v44, %v3792_v41 }
 0x1dc   : > { %v3802_v52 = vadd.f32 %v3767_v18, %v990_v50  ;;  %3142 = vtanh.f32 %v1027_v45 }
 0x1dd   : > { %v881_v56 = vpop.f32.mrb[8].mxu0  ;;  %v994_v57 = vpop.f32.mrb[8].mxu1  ;;  %v1056_v58 = vsel %vm1055_vm2, %v1047_v55, 0.0 }
 0x1de   : > { %v3139_v59 = vpop.eup %3138  ;;  %v1028_v62 = vadd.f32 %v3751_v3, %v881_v56  ;;  %v3808_v63 = vadd.f32 %v3763_v14, %v994_v57  ;;  %1057 = vadd.xlane.f32.xlu1 %v1056_v58  ;;  %v883_v1 = vpop.f32.mrb[9].mxu0 }
 0x1df   : > { %v996_v2 = vpop.f32.mrb[9].mxu1  ;;  %v3811_v4 = vadd.f32 %v3765_v15, %v883_v1  ;;  %v1048_v7 = vmul.f32 %v3139_v59, %v3792_v41 }
 0x1e0   : > { %v3814_v5 = vadd.f32 %v3767_v18, %v996_v2  ;;  %3144 = vtanh.f32 %v1028_v62 }
 0x1e1   : > { %v887_v8 = vpop.f32.mrb[10].mxu0  ;;  %v1000_v9 = vpop.f32.mrb[10].mxu1  ;;  %v3818_v10 = vsel %vm1055_vm2, %v1048_v7, 0.0 }
 0x1e2   : > { %v3141_v19 = vpop.eup %3140  ;;  %v1029_v20 = vadd.f32 %v3751_v3, %v887_v8  ;;  %v3822_v21 = vadd.f32 %v3763_v14, %v1000_v9  ;;  %v889_v24 = vpop.f32.mrb[11].mxu0 }
 0x1e3   : > { %v1002_v25 = vpop.f32.mrb[11].mxu1  ;;  %v3825_v30 = vadd.f32 %v3765_v15, %v889_v24  ;;  %v1049_v32 = vmul.f32 %v3141_v19, %v3792_v41 }
 0x1e4   : > { %v3828_v31 = vadd.f32 %v3767_v18, %v1002_v25  ;;  %3146 = vtanh.f32 %v1029_v20  ;;  %v1156_v25 = vadd.f32 %v3765_v15, %v3759_v11 }
 0x1e5   : > { %v893_v36 = vpop.f32.mrb[12].mxu0  ;;  %v1006_v37 = vpop.f32.mrb[12].mxu1  ;;  %v3832_v42 = vsel %vm1055_vm2, %v1049_v32, 0.0 }
 0x1e6   : > { %v3143_v43 = vpop.eup %3142  ;;  %v1030_v44 = vadd.f32 %v3751_v3, %v893_v36  ;;  %v3836_v45 = vadd.f32 %v3763_v14, %v1006_v37  ;;  %v895_v49 = vpop.f32.mrb[13].mxu0 }
 0x1e7   : > { %v1008_v50 = vpop.f32.mrb[13].mxu1  ;;  %v3839_v55 = vadd.f32 %v3765_v15, %v895_v49  ;;  %v1050_v57 = vmul.f32 %v3143_v43, %v3792_v41 }
 0x1e8   : > { %v3842_v56 = vadd.f32 %v3767_v18, %v1008_v50  ;;  %3148 = vtanh.f32 %v1030_v44 }
 0x1e9   : > { %v899_v58 = vpop.f32.mrb[14].mxu0  ;;  %v1012_v59 = vpop.f32.mrb[14].mxu1  ;;  %v1065_v62 = vsel %vm1055_vm2, %v1050_v57, 0.0 }
 0x1ea   : > { %v3145_v1 = vpop.eup %3144  ;;  %v1031_v2 = vadd.f32 %v3751_v3, %v899_v58  ;;  %v3848_v7 = vadd.f32 %v3763_v14, %v1012_v59  ;;  %1066 = vadd.xlane.f32.xlu1 %v1065_v62  ;;  %v901_v8 = vpop.f32.mrb[15].mxu0  ;;  %v1157_v3 = vadd.f32 %v3763_v14, %v3753_v6 }
 0x1eb   : > { %v1014_v9 = vpop.f32.mrb[15].mxu1  ;;  %v3851_v19 = vadd.f32 %v3765_v15, %v901_v8  ;;  %v1051_v24 = vmul.f32 %v3145_v1, %v3792_v41 }
 0x1ec   : > { %v3854_v20 = vadd.f32 %v3767_v18, %v1014_v9  ;;  %3150 = vtanh.f32 %v1031_v2 }
 0x1ed   : > { %v1288_v32 = vpop.f32.mrb[16].mxu0  ;;  %v1359_v36 = vpop.f32.mrb[16].mxu1  ;;  %v3862_v37 = vsel %vm1055_vm2, %v1051_v24, 0.0 }
 0x1ee   : > { %v3147_v43 = vpop.eup %3146  ;;  %v1363_v44 = vadd.f32 %v1288_v32, %v1156_v25  ;;  %v1290_v49 = vpop.f32.mrb[17].mxu0 }
 0x1ef   : > { %v2860_v50 = vpop.f32.mrb[17].mxu1  ;;  %v1370_v57 = vadd.f32 %v1290_v49, %v1157_v3  ;;  %v1052_v58 = vmul.f32 %v3147_v43, %v3792_v41  ;;  %v3875_v3 = vld [vmem:[%s4078_s9] ss:$0 sm:$0xff] }
 0x1f0   : > { %v2773_v59 = vmul.f32 -1.442695, %v1363_v44  ;;  %v1384_v43 = vadd.f32 %v3875_v3, %v1359_v36 }
 0x1f1   : > { %v1071_v62 = vsel %vm1055_vm2, %v1052_v58, 0.0  ;;  %v2774_v14 = vmul.f32 -1.442695, %v1370_v57 }
 0x1f2   : > { %v3149_v11 = vpop.eup %3148  ;;  %3152 = vpow2.f32 %v2773_v59  ;;  %1072 = vadd.xlane.f32.xlu1 %v1071_v62 }
 0x1f3   : > { %v1053_v6 = vmul.f32 %v3149_v11, %v3792_v41  ;;  %3154 = vpow2.f32 %v2774_v14 }
 0x1f5   : > { %v3868_v15 = vsel %vm1055_vm2, %v1053_v6, 0.0 }
 0x1f6   : > { %v3151_v1 = vpop.eup %3150 }
 0x1f7   : > { %v1054_v2 = vmul.f32 %v3151_v1, %v3792_v41  ;;  %v1158_v41 = vadd.f32 %v3767_v18, %v3761_v12 }
 0x1f9   : > { %v1077_v8 = vsel %vm1055_vm2, %v1054_v2, 0.0 }
 0x1fa   : > { %1078 = vadd.xlane.f32.xlu1 %v1077_v8 }
 0x1fc   : > { %v3153_v9 = vpop.eup %3152 }
 0x1fd   : > { %v1367_v24 = vadd.f32 1.0, %v3153_v9  ;;  %v3155_v25 = vpop.eup %3154 }
 0x1fe   : > { %v1374_v32 = vadd.f32 1.0, %v3155_v25 }
 0x1ff   : > { %3156 = vrcp.f32 %v1367_v24 }
 0x200   : > { %3158 = vrcp.f32 %v1374_v32 }
 0x209   : > { %v3157_v44 = vpop.eup %3156 }
 0x20a   : > { %v1385_v49 = vmul.f32 %v3157_v44, %v1384_v43  ;;  %v3159_v57 = vpop.eup %3158 }
 0x20b   : > { %v1388_v58 = vsub.f32 1.0, %v3159_v57  ;;  %v1390_v11 = vmul.f32 0.0, %v3159_v57 }
 0x20c   : > { %v1386_v50 = vadd.f32 %v1385_v49, %v1158_v41 }
 0x20e   : > { %3160 = vtanh.f32 %v1386_v50 }
 0x218   : > { %v3161_v59 = vpop.eup %3160 }
 0x219   : > { %v1389_v62 = vmul.f32 %v3161_v59, %v1388_v58 }
 0x21b   : > { %v1391_v6 = vadd.f32 %v1390_v11, %v1389_v62 }
 0x21d   : > { %2776 = vmatmul.mubr.msk.f32.vlgmr.msra.gmra.mrb[18].mxu0 %vm766_vm0, %v1391_v6  ;;  %2870 = vmatmul.mubr.msk.f32.vlgmr.msra.gmra.mrb[18].mxu1 %vm766_vm0, %v1391_v6 }
 0x21e   : > { %2985 = vmatpush1.bf16.msra.mxu0 %v3639_v13  ;;  %2992 = vmatpush3.bf16.msra.mxu1 %v3647_v23 }
 0x21f   : > { %2987 = vmatprep.subr.bf16.mxu0 %v3644_v17  ;;  %2993 = vmatprep.subr.bf16.mxu1 %v3388_v61 }
 0x220   : > { %1633 = vmatprep.mubr.f32.mxu0 %v3387_v46  ;;  %2880 = vmatprep.mubr.msk.f32.mxu1 %vm3389_vm1, %v3387_v46 }
 0x222   : > { %2989 = vmatpush1.bf16.msra.mxu0 %v3655_v26  ;;  %2995 = vmatpush3.bf16.msra.mxu1 %v3664_v33 }
 0x223   : > { %2997 = vmatprep.subr.bf16.mxu0 %v3623_v53  ;;  %3004 = vmatprep.subr.bf16.mxu1 %v3388_v61 }
 0x2f0   : > { %v1465_v12 = vpop.f32.mrb[18].mxu0  ;;  %v1536_v18 = vpop.f32.mrb[18].mxu1 }
 0x2f1   : > { %v1540_v36 = vadd.f32 %v1465_v12, %v3774_v28  ;;  %v1467_v14 = vpop.f32.mrb[19].mxu0  ;;  %v2871_v1 = vpop.f32.mrb[19].mxu1  ;;  %v1554_v44 = vadd.f32 %v3875_v3, %v1536_v18 }
 0x2f2   : > { %v1547_v2 = vadd.f32 %v1467_v14, %v3771_v22 }
 0x2f3   : > { %v2778_v8 = vmul.f32 -1.442695, %v1540_v36 }
 0x2f4   : > { %v2779_v9 = vmul.f32 -1.442695, %v1547_v2 }
 0x2f5   : > { %3162 = vpow2.f32 %v2778_v8 }
 0x2f6   : > { %3164 = vpow2.f32 %v2779_v9 }
 0x2ff   : > { %v3163_v24 = vpop.eup %3162 }
 0x300   : > { %v1544_v25 = vadd.f32 1.0, %v3163_v24  ;;  %v3165_v32 = vpop.eup %3164 }
 0x301   : > { %v1551_v43 = vadd.f32 1.0, %v3165_v32 }
 0x302   : > { %3166 = vrcp.f32 %v1544_v25 }
 0x303   : > { %3168 = vrcp.f32 %v1551_v43 }
 0x30c   : > { %v3167_v41 = vpop.eup %3166 }
 0x30d   : > { %v1555_v49 = vmul.f32 %v3167_v41, %v1554_v44  ;;  %v3169_v50 = vpop.eup %3168 }
 0x30e   : > { %v1558_v57 = vsub.f32 1.0, %v3169_v50  ;;  %v1560_v59 = vmul.f32 %v3169_v50, %v1391_v6 }
 0x30f   : > { %v1556_v28 = vadd.f32 %v1555_v49, %v3777_v29 }
 0x311   : > { %3170 = vtanh.f32 %v1556_v28 }
 0x31b   : > { %v3171_v22 = vpop.eup %3170 }
 0x31c   : > { %v1559_v58 = vmul.f32 %v3171_v22, %v1558_v57 }
 0x31e   : > { %v1561_v62 = vadd.f32 %v1560_v59, %v1559_v58 }
 0x320   : > { %2780 = vmatmul.mubr.msk.f32.vlgmr.msra.gmra.mrb[20].mxu0 %vm766_vm0, %v1561_v62  ;;  %2881 = vmatmul.mubr.msk.f32.vlgmr.msra.gmra.mrb[20].mxu1 %vm766_vm0, %v1561_v62 }
 0x321   : > { %2999 = vmatpush1.bf16.msra.mxu0 %v3639_v13  ;;  %3006 = vmatpush3.bf16.msra.mxu1 %v3647_v23 }
 0x322   : > { %3001 = vmatprep.subr.bf16.mxu0 %v3644_v17  ;;  %3007 = vmatprep.subr.bf16.mxu1 %v3388_v61 }
 0x323   : > { %1803 = vmatprep.mubr.f32.mxu0 %v3387_v46  ;;  %2891 = vmatprep.mubr.msk.f32.mxu1 %vm3389_vm1, %v3387_v46 }
 0x325   : > { %3003 = vmatpush1.bf16.msra.mxu0 %v3655_v26  ;;  %3009 = vmatpush3.bf16.msra.mxu1 %v3664_v33 }
 0x326   : > { %3011 = vmatprep.subr.bf16.mxu0 %v3623_v53  ;;  %3018 = vmatprep.subr.bf16.mxu1 %v3388_v61 }
 0x3f3   : > { %v1635_v29 = vpop.f32.mrb[20].mxu0  ;;  %v1706_v11 = vpop.f32.mrb[20].mxu1 }
 0x3f4   : > { %v1710_v6 = vadd.f32 %v1635_v29, %v3784_v38  ;;  %v1637_v12 = vpop.f32.mrb[21].mxu0  ;;  %v2882_v18 = vpop.f32.mrb[21].mxu1  ;;  %v1724_v25 = vadd.f32 %v3875_v3, %v1706_v11 }
 0x3f5   : > { %v1717_v36 = vadd.f32 %v1637_v12, %v3781_v35 }
 0x3f6   : > { %v2782_v14 = vmul.f32 -1.442695, %v1710_v6 }
 0x3f7   : > { %v2783_v1 = vmul.f32 -1.442695, %v1717_v36 }
 0x3f8   : > { %3172 = vpow2.f32 %v2782_v14 }
 0x3f9   : > { %3174 = vpow2.f32 %v2783_v1 }
 0x402   : > { %v3173_v2 = vpop.eup %3172 }
 0x403   : > { %v1714_v8 = vadd.f32 1.0, %v3173_v2  ;;  %v3175_v9 = vpop.eup %3174 }
 0x404   : > { %v1721_v24 = vadd.f32 1.0, %v3175_v9 }
 0x405   : > { %3176 = vrcp.f32 %v1714_v8 }
 0x406   : > { %3178 = vrcp.f32 %v1721_v24 }
 0x40f   : > { %v3177_v32 = vpop.eup %3176 }
 0x410   : > { %v1725_v43 = vmul.f32 %v3177_v32, %v1724_v25  ;;  %v3179_v44 = vpop.eup %3178 }
 0x411   : > { %v1728_v41 = vsub.f32 1.0, %v3179_v44  ;;  %v1730_v28 = vmul.f32 %v3179_v44, %v1561_v62 }
 0x412   : > { %v1726_v38 = vadd.f32 %v1725_v43, %v3787_v39 }
 0x414   : > { %3180 = vtanh.f32 %v1726_v38 }
 0x41e   : > { %v3181_v35 = vpop.eup %3180 }
 0x41f   : > { %v1729_v49 = vmul.f32 %v3181_v35, %v1728_v41 }
 0x421   : > { %v1731_v50 = vadd.f32 %v1730_v28, %v1729_v49 }
 0x423   : > { %2784 = vmatmul.mubr.msk.f32.vlgmr.msra.gmra.mrb[22].mxu0 %vm766_vm0, %v1731_v50  ;;  %2892 = vmatmul.mubr.msk.f32.vlgmr.msra.gmra.mrb[22].mxu1 %vm766_vm0, %v1731_v50 }
 0x424   : > { %3013 = vmatpush1.bf16.msra.mxu0 %v3639_v13  ;;  %3020 = vmatpush3.bf16.msra.mxu1 %v3647_v23 }
 0x425   : > { %3015 = vmatprep.subr.bf16.mxu0 %v3644_v17  ;;  %3021 = vmatprep.subr.bf16.mxu1 %v3388_v61 }
 0x426   : > { %1973 = vmatprep.mubr.f32.mxu0 %v3387_v46  ;;  %2902 = vmatprep.mubr.msk.f32.mxu1 %vm3389_vm1, %v3387_v46 }
 0x428   : > { %3017 = vmatpush1.bf16.msra.mxu0 %v3655_v26  ;;  %3023 = vmatpush3.bf16.msra.mxu1 %v3664_v33 }
 0x429   : > { %3025 = vmatprep.subr.bf16.mxu0 %v3623_v53  ;;  %3032 = vmatprep.subr.bf16.mxu1 %v3388_v61 }
 0x4f6   : > { %v1805_v39 = vpop.f32.mrb[22].mxu0  ;;  %v1876_v57 = vpop.f32.mrb[22].mxu1 }
 0x4f7   : > { %v1880_v22 = vadd.f32 %v1805_v39, %v3799_v51  ;;  %v1807_v58 = vpop.f32.mrb[23].mxu0  ;;  %v2893_v59 = vpop.f32.mrb[23].mxu1  ;;  %v1894_v14 = vadd.f32 %v3875_v3, %v1876_v57 }
 0x4f8   : > { %v1887_v62 = vadd.f32 %v1807_v58, %v3796_v48 }
 0x4f9   : > { %v2786_v29 = vmul.f32 -1.442695, %v1880_v22 }
 0x4fa   : > { %v2787_v11 = vmul.f32 -1.442695, %v1887_v62 }
 0x4fb   : > { %3182 = vpow2.f32 %v2786_v29 }
 0x4fc   : > { %3184 = vpow2.f32 %v2787_v11 }
 0x505   : > { %v3183_v6 = vpop.eup %3182 }
 0x506   : > { %v1884_v12 = vadd.f32 1.0, %v3183_v6  ;;  %v3185_v18 = vpop.eup %3184 }
 0x507   : > { %v1891_v36 = vadd.f32 1.0, %v3185_v18 }
 0x508   : > { %3186 = vrcp.f32 %v1884_v12 }
 0x509   : > { %3188 = vrcp.f32 %v1891_v36 }
 0x512   : > { %v3187_v1 = vpop.eup %3186 }
 0x513   : > { %v1895_v2 = vmul.f32 %v3187_v1, %v1894_v14  ;;  %v3189_v8 = vpop.eup %3188 }
 0x514   : > { %v1898_v9 = vsub.f32 1.0, %v3189_v8  ;;  %v1900_v25 = vmul.f32 %v3189_v8, %v1731_v50 }
 0x515   : > { %v1896_v51 = vadd.f32 %v1895_v2, %v3802_v52 }
 0x517   : > { %3190 = vtanh.f32 %v1896_v51 }
 0x521   : > { %v3191_v48 = vpop.eup %3190 }
 0x522   : > { %v1899_v24 = vmul.f32 %v3191_v48, %v1898_v9 }
 0x524   : > { %v1901_v32 = vadd.f32 %v1900_v25, %v1899_v24 }
 0x526   : > { %2788 = vmatmul.mubr.msk.f32.vlgmr.msra.gmra.mrb[24].mxu0 %vm766_vm0, %v1901_v32  ;;  %2903 = vmatmul.mubr.msk.f32.vlgmr.msra.gmra.mrb[24].mxu1 %vm766_vm0, %v1901_v32 }
 0x527   : > { %3027 = vmatpush1.bf16.msra.mxu0 %v3639_v13  ;;  %3034 = vmatpush3.bf16.msra.mxu1 %v3647_v23 }
 0x528   : > { %3029 = vmatprep.subr.bf16.mxu0 %v3644_v17  ;;  %3035 = vmatprep.subr.bf16.mxu1 %v3388_v61 }
 0x529   : > { %2143 = vmatprep.mubr.f32.mxu0 %v3387_v46  ;;  %2913 = vmatprep.mubr.msk.f32.mxu1 %vm3389_vm1, %v3387_v46 }
 0x52b   : > { %3031 = vmatpush1.bf16.msra.mxu0 %v3655_v26  ;;  %3037 = vmatpush3.bf16.msra.mxu1 %v3664_v33 }
 0x52c   : > { %3039 = vmatprep.subr.bf16.mxu0 %v3623_v53  ;;  %3046 = vmatprep.subr.bf16.mxu1 %v3388_v61 }
 0x5f9   : > { %v1975_v52 = vpop.f32.mrb[24].mxu0  ;;  %v2046_v43 = vpop.f32.mrb[24].mxu1 }
 0x5fa   : > { %v2050_v38 = vadd.f32 %v1975_v52, %v3811_v4  ;;  %v1977_v44 = vpop.f32.mrb[25].mxu0  ;;  %v2904_v41 = vpop.f32.mrb[25].mxu1  ;;  %v2064_v58 = vadd.f32 %v3875_v3, %v2046_v43 }
 0x5fb   : > { %v2057_v35 = vadd.f32 %v1977_v44, %v3808_v63 }
 0x5fc   : > { %v2790_v49 = vmul.f32 -1.442695, %v2050_v38 }
 0x5fd   : > { %v2791_v28 = vmul.f32 -1.442695, %v2057_v35 }
 0x5fe   : > { %3192 = vpow2.f32 %v2790_v49 }
 0x5ff   : > { %3194 = vpow2.f32 %v2791_v28 }
 0x608   : > { %v3193_v50 = vpop.eup %3192 }
 0x609   : > { %v2054_v39 = vadd.f32 1.0, %v3193_v50  ;;  %v3195_v57 = vpop.eup %3194 }
 0x60a   : > { %v2061_v22 = vadd.f32 1.0, %v3195_v57 }
 0x60b   : > { %3196 = vrcp.f32 %v2054_v39 }
 0x60c   : > { %3198 = vrcp.f32 %v2061_v22 }
 0x615   : > { %v3197_v59 = vpop.eup %3196 }
 0x616   : > { %v2065_v62 = vmul.f32 %v3197_v59, %v2064_v58  ;;  %v3199_v29 = vpop.eup %3198 }
 0x617   : > { %v2068_v11 = vsub.f32 1.0, %v3199_v29  ;;  %v2070_v12 = vmul.f32 %v3199_v29, %v1901_v32 }
 0x618   : > { %v2066_v4 = vadd.f32 %v2065_v62, %v3814_v5 }
 0x61a   : > { %3200 = vtanh.f32 %v2066_v4 }
 0x624   : > { %v3201_v63 = vpop.eup %3200 }
 0x625   : > { %v2069_v6 = vmul.f32 %v3201_v63, %v2068_v11 }
 0x627   : > { %v2071_v18 = vadd.f32 %v2070_v12, %v2069_v6 }
 0x629   : > { %2792 = vmatmul.mubr.msk.f32.vlgmr.msra.gmra.mrb[26].mxu0 %vm766_vm0, %v2071_v18  ;;  %2914 = vmatmul.mubr.msk.f32.vlgmr.msra.gmra.mrb[26].mxu1 %vm766_vm0, %v2071_v18 }
 0x62a   : > { %3041 = vmatpush1.bf16.msra.mxu0 %v3639_v13  ;;  %3048 = vmatpush3.bf16.msra.mxu1 %v3647_v23 }
 0x62b   : > { %3043 = vmatprep.subr.bf16.mxu0 %v3644_v17  ;;  %3049 = vmatprep.subr.bf16.mxu1 %v3388_v61 }
 0x62c   : > { %2313 = vmatprep.mubr.f32.mxu0 %v3387_v46  ;;  %2924 = vmatprep.mubr.msk.f32.mxu1 %vm3389_vm1, %v3387_v46 }
 0x62e   : > { %3045 = vmatpush1.bf16.msra.mxu0 %v3655_v26  ;;  %3051 = vmatpush3.bf16.msra.mxu1 %v3664_v33 }
 0x62f   : > { %3053 = vmatprep.subr.bf16.mxu0 %v3623_v53  ;;  %3060 = vmatprep.subr.bf16.mxu1 %v3388_v61 }
 0x6fc   : > { %v2145_v5 = vpop.f32.mrb[26].mxu0  ;;  %v2216_v36 = vpop.f32.mrb[26].mxu1 }
 0x6fd   : > { %v2220_v14 = vadd.f32 %v2145_v5, %v3825_v30  ;;  %v2147_v1 = vpop.f32.mrb[27].mxu0  ;;  %v2915_v2 = vpop.f32.mrb[27].mxu1  ;;  %v2234_v53 = vadd.f32 %v3875_v3, %v2216_v36 }
 0x6fe   : > { %v2227_v51 = vadd.f32 %v2147_v1, %v3822_v21 }
 0x6ff   : > { %v2794_v8 = vmul.f32 -1.442695, %v2220_v14 }
 0x700   : > { %v2795_v9 = vmul.f32 -1.442695, %v2227_v51 }
 0x701   : > { %3202 = vpow2.f32 %v2794_v8 }
 0x702   : > { %3204 = vpow2.f32 %v2795_v9 }
 0x70b   : > { %v3203_v48 = vpop.eup %3202 }
 0x70c   : > { %v2224_v24 = vadd.f32 1.0, %v3203_v48  ;;  %v3205_v25 = vpop.eup %3204 }
 0x70d   : > { %v2231_v32 = vadd.f32 1.0, %v3205_v25 }
 0x70e   : > { %3206 = vrcp.f32 %v2224_v24 }
 0x70f   : > { %3208 = vrcp.f32 %v2231_v32 }
 0x718   : > { %v3207_v52 = vpop.eup %3206 }
 0x719   : > { %v2235_v43 = vmul.f32 %v3207_v52, %v2234_v53  ;;  %v3209_v38 = vpop.eup %3208 }
 0x71a   : > { %v2238_v44 = vsub.f32 1.0, %v3209_v38  ;;  %v2240_v35 = vmul.f32 %v3209_v38, %v2071_v18 }
 0x71b   : > { %v2236_v30 = vadd.f32 %v2235_v43, %v3828_v31 }
 0x71d   : > { %3210 = vtanh.f32 %v2236_v30 }
 0x727   : > { %v3211_v21 = vpop.eup %3210 }
 0x728   : > { %v2239_v41 = vmul.f32 %v3211_v21, %v2238_v44 }
 0x72a   : > { %v2241_v49 = vadd.f32 %v2240_v35, %v2239_v41 }
 0x72c   : > { %2796 = vmatmul.mubr.msk.f32.vlgmr.msra.gmra.mrb[28].mxu0 %vm766_vm0, %v2241_v49  ;;  %2925 = vmatmul.mubr.msk.f32.vlgmr.msra.gmra.mrb[28].mxu1 %vm766_vm0, %v2241_v49 }
 0x72d   : > { %3055 = vmatpush1.bf16.msra.mxu0 %v3639_v13  ;;  %3062 = vmatpush3.bf16.msra.mxu1 %v3647_v23 }
 0x72e   : > { %3057 = vmatprep.subr.bf16.mxu0 %v3644_v17  ;;  %3063 = vmatprep.subr.bf16.mxu1 %v3388_v61 }
 0x72f   : > { %2483 = vmatprep.mubr.f32.mxu0 %v3387_v46  ;;  %2935 = vmatprep.mubr.msk.f32.mxu1 %vm3389_vm1, %v3387_v46 }
 0x731   : > { %3059 = vmatpush1.bf16.msra.mxu0 %v3655_v26  ;;  %3065 = vmatpush3.bf16.msra.mxu1 %v3664_v33 }
 0x7ff   : > { %v2315_v31 = vpop.f32.mrb[28].mxu0  ;;  %v2386_v28 = vpop.f32.mrb[28].mxu1 }
 0x800   : > { %v2390_v50 = vadd.f32 %v2315_v31, %v3839_v55  ;;  %v2317_v13 = vpop.f32.mrb[29].mxu0  ;;  %v2926_v39 = vpop.f32.mrb[29].mxu1  ;;  %v2404_v26 = vadd.f32 %v3875_v3, %v2386_v28 }
 0x801   : > { %v2397_v23 = vadd.f32 %v2317_v13, %v3836_v45 }
 0x802   : > { %v2798_v17 = vmul.f32 -1.442695, %v2390_v50 }
 0x803   : > { %v2799_v61 = vmul.f32 -1.442695, %v2397_v23 }
 0x804   : > { %3212 = vpow2.f32 %v2798_v17 }
 0x805   : > { %3214 = vpow2.f32 %v2799_v61 }
 0x80e   : > { %v3213_v57 = vpop.eup %3212 }
 0x80f   : > { %v2394_v22 = vadd.f32 1.0, %v3213_v57  ;;  %v3215_v46 = vpop.eup %3214 }
 0x810   : > { %v2401_v58 = vadd.f32 1.0, %v3215_v46 }
 0x811   : > { %3216 = vrcp.f32 %v2394_v22 }
 0x812   : > { %3218 = vrcp.f32 %v2401_v58 }
 0x81b   : > { %v3217_v33 = vpop.eup %3216 }
 0x81c   : > { %v2405_v59 = vmul.f32 %v3217_v33, %v2404_v26  ;;  %v3219_v62 = vpop.eup %3218 }
 0x81d   : > { %v2408_v4 = vsub.f32 1.0, %v3219_v62  ;;  %v2410_v11 = vmul.f32 %v3219_v62, %v2241_v49  ;;  %v1081_v49 = vstv %s1080_s21  ;;  %s4113_s21 = smov %s4112_s29 }
 0x81e   : > { %v2406_v55 = vadd.f32 %v2405_v59, %v3842_v56 }
 0x820   : > { %3220 = vtanh.f32 %v2406_v55 }
 0x82a   : > { %v3221_v45 = vpop.eup %3220 }
 0x82b   : > { %v2409_v29 = vmul.f32 %v3221_v45, %v2408_v4 }
 0x82d   : > { %v2411_v63 = vadd.f32 %v2410_v11, %v2409_v29 }
 0x82f   : > { %2800 = vmatmul.mubr.msk.f32.vlgmr.msra.gmra.mrb[30].mxu0 %vm766_vm0, %v2411_v63  ;;  %2936 = vmatmul.mubr.msk.f32.vlgmr.msra.gmra.mrb[30].mxu1 %vm766_vm0, %v2411_v63 }
 0x902   : > { %v2485_v6 = vpop.f32.mrb[30].mxu0  ;;  %v2556_v12 = vpop.f32.mrb[30].mxu1 }
 0x903   : > { %v2560_v18 = vadd.f32 %v2485_v6, %v3851_v19  ;;  %v2487_v5 = vpop.f32.mrb[31].mxu0  ;;  %v2937_v36 = vpop.f32.mrb[31].mxu1  ;;  %v2574_v48 = vadd.f32 %v3875_v3, %v2556_v12 }
 0x904   : > { %v2567_v14 = vadd.f32 %v2487_v5, %v3848_v7 }
 0x905   : > { %v2802_v56 = vmul.f32 -1.442695, %v2560_v18 }
 0x906   : > { %v2803_v1 = vmul.f32 -1.442695, %v2567_v14 }
 0x907   : > { %3222 = vpow2.f32 %v2802_v56 }
 0x908   : > { %3224 = vpow2.f32 %v2803_v1 }
 0x911   : > { %v3223_v2 = vpop.eup %3222 }
 0x912   : > { %v2564_v51 = vadd.f32 1.0, %v3223_v2  ;;  %v3225_v8 = vpop.eup %3224 }
 0x913   : > { %v2571_v9 = vadd.f32 1.0, %v3225_v8 }
 0x914   : > { %3226 = vrcp.f32 %v2564_v51 }
 0x915   : > { %3228 = vrcp.f32 %v2571_v9 }
 0x91e   : > { %v3227_v24 = vpop.eup %3226 }
 0x91f   : > { %v2575_v25 = vmul.f32 %v3227_v24, %v2574_v48  ;;  %v3229_v32 = vpop.eup %3228 }
 0x920   : > { %v2578_v53 = vsub.f32 1.0, %v3229_v32  ;;  %v2580_v43 = vmul.f32 %v3229_v32, %v2411_v63 }
 0x921   : > { %v2576_v19 = vadd.f32 %v2575_v25, %v3854_v20 }
 0x923   : > { %3230 = vtanh.f32 %v2576_v19 }
 0x92d   : > { %v3231_v7 = vpop.eup %3230 }
 0x92e   : > { %v2579_v52 = vmul.f32 %v3231_v7, %v2578_v53 }
 0x930   : > { %v2581_v30 = vadd.f32 %v2580_v43, %v2579_v52 }
 0x932   : > { %v2582_v38 = vsel %vm766_vm0, %v2581_v30, 0.0 }
 0x933   : > { %2583 = vadd.xlane.f32.xlu0 %v2582_v38 }
 0x937   : > { %1060 = vadd.xlane.f32.xlu0 %v3818_v10  ;;  %v1058_v10 = vpop.xlane.xlu1 %1057 }
 0x938   : > { %v1082_v28 = vadd.f32 %v1081_v49, %v1058_v10 }
 0x93b   : > { %1063 = vadd.xlane.f32.xlu0 %v3832_v42  ;;  %v1067_v13 = vpop.xlane.xlu1 %1066 }
 0x93c   : > { %v1085_v17 = vadd.f32 %v1081_v49, %v1067_v13 }
 0x93e   : > { %v1096_v57 = vmul.f32 1.442695, %v1085_v17  ;;  %v2616_v17 = vstv %s2615_s23  ;;  %s3314_s23 = scalar_lea.vmem %s3313_s22, 256 }
 0x93f   : > { %1069 = vadd.xlane.f32.xlu0 %v3862_v37  ;;  %v1073_v22 = vpop.xlane.xlu1 %1072  ;;  %p3316_p13 = scmp.lt.s32.totalorder %s3314_s23, %s3308_s16 }
 0x940   : > { %v1087_v26 = vadd.f32 %v1081_v49, %v1073_v22 }
 0x941   : > { %p3317_p2 = por %p3316_p13, %p3315_p9 }
 0x942   : > { %v1100_v4 = vmul.f32 1.442695, %v1087_v26 }
 0x943   : > { %1075 = vadd.xlane.f32.xlu0 %v3868_v15  ;;  %v1090_v15 = vmul.f32 1.442695, %v1082_v28  ;;  %v1079_v45 = vpop.xlane.xlu1 %1078  ;;  %p3318_p0 = pnand %p3317_p2, %p3311_p8 }
 0x944   : > { %v1089_v6 = vadd.f32 %v1081_v49, %v1079_v45 }
 0x946   : > { %v1104_v36 = vmul.f32 1.442695, %v1089_v6 }
 0x9c0   : > { %v2584_v3 = vpop.xlane.xlu0 %2583 }
 0x9c1   : > { %v2586_v20 = vmul.f32 0.03125, %v2584_v3 }
 0x9c3   : > { %v3991_v44 = vsub.f32 %v2581_v30, %v2586_v20 }
 0x9c4   : > { %v1061_v35 = vpop.xlane.xlu0 %1060 }
 0x9c5   : > { %v2588_v21 = vmul.f32 %v3991_v44, %v3991_v44  ;;  %v1083_v42 = vadd.f32 %v1081_v49, %v1061_v35 }
 0x9c7   : > { %v2589_v41 = vsel %vm766_vm0, %v2588_v21, 0.0  ;;  %v1092_v50 = vmul.f32 1.442695, %v1083_v42 }
 0x9c8   : > { %2590 = vadd.xlane.f32.xlu0 %v2589_v41  ;;  %v1064_v31 = vpop.xlane.xlu0 %1063 }
 0x9c9   : > { %v1084_v37 = vadd.f32 %v1081_v49, %v1064_v31  ;;  %3232 = vpow2.f32 %v1092_v50  ;;  %v2804_v50 = vld [vmem:[%s4079_s10] ss:$0 sm:$0xff] }
 0x9ca   : > { %3234 = vpow2.f32 %v1090_v15 }
 0x9cb   : > { %v1094_v39 = vmul.f32 1.442695, %v1084_v37 }
 0x9cc   : > { %v1070_v23 = vpop.xlane.xlu0 %1069 }
 0x9cd   : > { %3236 = vpow2.f32 %v1094_v39  ;;  %v1086_v61 = vadd.f32 %v1081_v49, %v1070_v23  ;;  %v2613_v23 = vstv %s2612_s19  ;;  %s2621_s19 = scalar_lea.sflag [#allocation9], %s3602_s20 }
 0x9ce   : > { %3238 = vpow2.f32 %v1096_v57 }
 0x9cf   : > { %v1098_v46 = vmul.f32 1.442695, %v1086_v61 }
 0x9d0   : > { %v1076_v58 = vpop.xlane.xlu0 %1075 }
 0x9d1   : > { %3240 = vpow2.f32 %v1098_v46  ;;  %v1088_v59 = vadd.f32 %v1081_v49, %v1076_v58 }
 0x9d2   : > { %3242 = vpow2.f32 %v1100_v4 }
 0x9d3   : > { %v3233_v33 = vpop.eup %3232  ;;  %v1102_v11 = vmul.f32 1.442695, %v1088_v59 }
 0x9d4   : > { %v3235_v55 = vpop.eup %3234  ;;  %v1107_v1 = vmul.f32 %v3233_v33, %v3657_v27 }
 0x9d5   : > { %v1129_v29 = vadd.f32 %v3235_v55, %v3233_v33  ;;  %3244 = vpow2.f32 %v1102_v11  ;;  %v1106_v8 = vmul.f32 %v3235_v55, %v3642_v16 }
 0x9d6   : > { %3246 = vpow2.f32 %v1104_v36  ;;  %v1115_v48 = vsel %vm766_vm0, %v1107_v1, 0.0 }
 0x9d7   : > { %v3237_v62 = vpop.eup %3236  ;;  %v1114_v25 = vsel %vm766_vm0, %v1106_v8, 0.0 }
 0x9d8   : > { %v1130_v63 = vadd.f32 %v3237_v62, %v1129_v29  ;;  %v3239_v12 = vpop.eup %3238  ;;  %v1108_v9 = vmul.f32 %v3237_v62, %v3672_v34  ;;  %v1116_v32 = vadd.f32 %v1115_v48, %v1114_v25 }
 0x9d9   : > { %v1109_v7 = vmul.f32 %v3239_v12, %v3686_v40 }
 0x9da   : > { %v1131_v18 = vadd.f32 %v3239_v12, %v1130_v63  ;;  %v1117_v19 = vsel %vm766_vm0, %v1108_v9, 0.0 }
 0x9db   : > { %v3241_v5 = vpop.eup %3240  ;;  %v1118_v52 = vadd.f32 %v1117_v19, %v1116_v32  ;;  %v1119_v30 = vsel %vm766_vm0, %v1109_v7, 0.0 }
 0x9dc   : > { %v1132_v14 = vadd.f32 %v3241_v5, %v1131_v18  ;;  %v3243_v56 = vpop.eup %3242  ;;  %v1110_v27 = vmul.f32 %v3241_v5, %v3697_v47 }
 0x9dd   : > { %v1120_v16 = vadd.f32 %v1119_v30, %v1118_v52  ;;  %v1111_v21 = vmul.f32 %v3243_v56, %v3707_v54 }
 0x9de   : > { %v1133_v2 = vadd.f32 %v3243_v56, %v1132_v14  ;;  %v1121_v3 = vsel %vm766_vm0, %v1110_v27, 0.0 }
 0x9df   : > { %v3245_v51 = vpop.eup %3244  ;;  %v1122_v35 = vadd.f32 %v1121_v3, %v1120_v16  ;;  %v1123_v49 = vsel %vm766_vm0, %v1111_v21, 0.0 }
 0x9e0   : > { %v1134_v24 = vadd.f32 %v3245_v51, %v1133_v2  ;;  %v3247_v53 = vpop.eup %3246  ;;  %v1112_v40 = vmul.f32 %v3245_v51, %v3717_v60 }
 0x9e1   : > { %v1124_v47 = vadd.f32 %v1123_v49, %v1122_v35  ;;  %v1113_v31 = vmul.f32 %v3247_v53, %v3726_v0  ;;  %v2805_v0 = vld [vmem:[%s4080_s11] ss:$0 sm:$0xff] }
 0x9e2   : > { %v1135_v43 = vadd.f32 %v3247_v53, %v1134_v24  ;;  %v1125_v10 = vsel %vm766_vm0, %v1112_v40, 0.0 }
 0x9e3   : > { %v1126_v42 = vadd.f32 %v1125_v10, %v1124_v47  ;;  %v1127_v54 = vsel %vm766_vm0, %v1113_v31, 0.0 }
 0x9e4   : > { %v1136_v38 = vadd.f32 1e-08, %v1135_v43 }
 0x9e5   : > { %v1128_v60 = vadd.f32 %v1127_v54, %v1126_v42 }
 0x9e6   : > { %3248 = vrcp.f32 %v1136_v38 }
 0x9f0   : > { %v3249_v28 = vpop.eup %3248 }
 0x9f1   : > { %v1138_v39 = vmul.f32 %v3249_v28, %v1128_v60 }
 0x9f3   : > { %v2614_v57 = vmul.f32 %v2613_v23, %v1138_v39 }
 0xa55   : > { %v2591_v34 = vpop.xlane.xlu0 %2590 }
 0xa56   : > { %v2592_v20 = vmul.f32 0.03125, %v2591_v34 }
 0xa58   : > { %v2593_v41 = vadd.f32 1e-05, %v2592_v20 }
 0xa5a   : > { %3250 = vrsqrt.f32 %v2593_v41 }
 0xa64   : > { %v3251_v37 = vpop.eup %3250 }
 0xa65   : > { %v2595_v15 = vmul.f32 %v3251_v37, %v3991_v44 }
 0xa67   : > { %v2603_v13 = vmul.f32 %v2804_v50, %v2595_v15 }
 0xa69   : > { %v2611_v61 = vadd.f32 %v2805_v0, %v2603_v13 }
 0xa6b   : > { %v2617_v22 = vmul.f32 %v2616_v17, %v2611_v61 }
 0xa6d   : > { %v2618_v46 = vadd.f32 %v2617_v22, %v2614_v57 }
 0xa6f   : > { %2619 = vst.msk [vmem:[%s614_s24] sm:$0xff] %vm766_vm0, %v2618_v46 }
 0xa70   : > { %3321 = shalt.err (!%p3318_p0)
}
 0xa71   : > { %s3322_s20 = scalar_lea.hbm %s4024_s12, 128  ;;  %s3326_s28 = scalar_lea.hbm %s4113_s21, 256 }
 0xa72   : > { %p3323_p5 = scmp.ne.s32.totalorder %s4024_s12, %s3322_s20  ;;  %p3327_p11 = scmp.lt.u32.totalorder %s4024_s12, %s4113_s21 }
 0xa73   : > { %p3328_p12 = scmp.lt.u32.totalorder %s3326_s28, %s3322_s20  ;;  %p3330_p7 = scmp.lt.u32.totalorder %s3322_s20, %s4024_s12 }
 0xa74   : > { %p3324_p6 = pnand %p3323_p5, %p4114_p4 }
 0xa75   : > { %p3329_p3 = por %p3328_p12, %p3327_p11 }
 0xa76   : > { %p3325_p10 = pneg %p3324_p6 }
 0xa77   : > { %p3331_p8 = por %p3330_p7, %p3329_p3 }
 0xa79   : > { %p3332_p9 = pnand %p3331_p8, %p3325_p10 }
 0xa7b   : > { %3335 = shalt.err (!%p3332_p9)
}
 0xa7c   : > { %3074 = dma.vmem_to_hbm [thread:$0]  (%p4114_p4), %s4026_s27, 128, %s4024_s12, %s2621_s19  }
 0xa7d PF: > { %s4115_s13 = sld [smem:[#allocation16_spill]]  ;;  %s4116_s29 = sld [smem:[#allocation20_spill]] }
 0xa83   : > { %s2646_s16 = sand.u32 1, %s4115_s13   ;;  %p4117_p13 = scmp.ne.s32.totalorder %s4116_s29, 0 }
 0xa84   : > { %s2647_s6 = scalar_lea.sflag [#allocation9], %s2646_s16 }
 0xa85   : > { %p3084_p2 = pnand %p2743_p1, %p4117_p13 }
 0xa87   : > { %3361 = dma.done.wait (!%p3084_p2), %s2647_s6, 128  }
 0xa88   : > { %3363 = vsyncadd (!%p3084_p2), %s2647_s6, 4294967168  ;;  %s4118_s15 = sld [smem:[#allocation17_spill]]  ;;  %s4119_s22 = sld [smem:[#allocation18_spill]] }
 0xa89   : > { %s4120_s29 = smov %s3370_s30  ;;  %s4121_s30 = smov %s3374_s14 }
 0xa8e   : > { %p27_p0 = scmp.ge.s32.totalorder %s4118_s15, 4   ;;  %s4122_s14 = smov %s4119_s22 }
 0xa90   :  { %29 = sbr.rel (!%p27_p0) target bundleno = 9 (0x9), region = 212 }
 0xa97   :  { %2652 = vsyncpa [#allocation8], 1 }
 0xa98   :  { %2654 = vsyncpa [#allocation8 + $0x1], 1 }
 0xa99   :  { %2655 = vsyncpa [#allocation11], 1 }
 0xa9a   :  { %2656 = vsyncpa [#allocation9], 1 }
 0xa9b   :  { %2658 = vsyncpa [#allocation9 + $0x1], 1 }

</bundles_post_ra>
